<compile_context>
chip_gen: v6e
topology: v6e:2x2x1
jax: 0.10.0
libtpu: 0.0.40
codegen_flags: <defaults>
</compile_context>

<pallas_src>
import math

import jax
import jax.numpy as jnp
import numpy as np
from jax.experimental import pallas as pl
from jax.experimental.pallas import tpu as pltpu


# -----------------------------------------------------------------------------
# Fused DCGRU cell kernel
# -----------------------------------------------------------------------------
def make_fused_dcgru_kernel(num_supports, K, D, U, M):
    """Returns the fused gate+candidate+combine kernel for one batch tile."""

    def kernel(x_ref, h_ref, sup_ref, w1x_ref, w1h_ref, w2x_ref, w2h_ref,
               b1_ref, b2_ref, out_ref, xsx_ref, xsh_ref, xsrh_ref):
        f32 = jnp.float32

        def run_chain(x_init, stack_ref, width):
            """Chebyshev diffusion chain; writes term m into
            stack_ref[:, m*width:(m+1)*width].

            NOTE: x0/x1 intentionally persist (and mutate) across supports,
            exactly matching the reference PyTorch variable scoping."""
            stack_ref[:, 0:width] = x_init
            m = 1
            if K > 0:
                x0 = x_init
                x1 = None
                for s in range(num_supports):
                    S = sup_ref[s]  # (R, R) Kronecker-lifted support
                    x1 = jnp.dot(S, x0, preferred_element_type=f32)
                    stack_ref[:, m * width:(m + 1) * width] = x1
                    m += 1
                    for _ in range(2, K + 1):
                        x2 = 2.0 * jnp.dot(S, x1,
                                           preferred_element_type=f32) - x0
                        stack_ref[:, m * width:(m + 1) * width] = x2
                        m += 1
                        x1, x0 = x2, x1

        x = x_ref[...]          # (R, D)
        h = h_ref[...]          # (R, U)

        # Diffusion terms of the input features: computed once, shared by the
        # gate GCONV and the candidate GCONV.
        run_chain(x, xsx_ref, D)
        # Diffusion terms of the hidden state (gate GCONV).
        run_chain(h, xsh_ref, U)

        xs_x = xsx_ref[...]     # (R, M*D)

        # Gate GCONV: one stacked projection per weight block (bias_start=1.0).
        gate = (jnp.dot(xs_x, w1x_ref[...], preferred_element_type=f32)
                + jnp.dot(xsh_ref[...], w1h_ref[...],
                          preferred_element_type=f32)
                + b1_ref[...])
        gate = jax.nn.sigmoid(gate)          # (R, 2U)
        r = gate[:, :U]
        u = gate[:, U:]

        # Candidate GCONV on (x_in, r*h) -- only the hidden-state chain needs
        # recomputation.
        run_chain(r * h, xsrh_ref, U)

        c = jnp.tanh(jnp.dot(xs_x, w2x_ref[...], preferred_element_type=f32)
                     + jnp.dot(xsrh_ref[...], w2h_ref[...],
                               preferred_element_type=f32)
                     + b2_ref[...])          # (R, U)

        # GRU combine (f32 elementwise).
        out_ref[...] = u * h + (1.0 - u) * c

    return kernel


# -----------------------------------------------------------------------------
# DCGRUCell forward (wrapper)
# -----------------------------------------------------------------------------
def dcgru_cell_forward(inputs, hx, supports, W1, b1, W2, b2, *,
                       num_nodes, num_units, max_diffusion_step,
                       batch_tile=None, donate_state=False):
    """inputs: (B, N*D)  hx: (B, N*U)  -> new_state: (B, N*U).

    W1: (C*M, 2U) reset/update-gate GCONV weight (original torch layout).
    W2: (C*M, U)  candidate GCONV weight.
    b1/b2: (1, 2U) / (1, U).
    supports: (S, N, N) dense random-walk matrices (already transposed).
    """
    B = inputs.shape[0]
    N, U, K = num_nodes, num_units, max_diffusion_step
    D = inputs.shape[1] // N
    S_num = supports.shape[0]
    M = S_num * K + 1
    C = D + U
    O1 = 2 * U

    TB = B if batch_tile is None else batch_tile
    assert B % TB == 0, "batch must be divisible by batch_tile"
    R = TB * N

    # --- weight re-layout (free wrapper-side plumbing) -----------------------
    # Original row index is c*M + m (c over concat(input, hidden) channels).
    # Split into input-channel / hidden-channel blocks and reorder rows to
    # (m-outer, c-inner) so the stacked diffusion terms contract directly.
    w1 = W1.reshape(C, M, O1)
    w2 = W2.reshape(C, M, U)
    w1x = w1[:D].transpose(1, 0, 2).reshape(M * D, O1)
    w1h = w1[D:].transpose(1, 0, 2).reshape(M * U, O1)
    w2x = w2[:D].transpose(1, 0, 2).reshape(M * D, U)
    w2h = w2[D:].transpose(1, 0, 2).reshape(M * U, U)

    # Kronecker-lift the supports so per-tile diffusion is a single 2-D
    # matmul over all TB batch elements in (TB*N, C) row layout.
    eye_tb = jnp.eye(TB, dtype=supports.dtype)
    sup_k = jnp.stack([jnp.kron(eye_tb, supports[s]) for s in range(S_num)],
                      axis=0)                       # (S, R, R)

    x_flat = inputs.reshape(B * N, D)
    h_flat = hx.reshape(B * N, U)

    def row_spec(width):
        return pl.BlockSpec((R, width), lambda i: (i, 0))

    def full_spec(arr):
        nd = arr.ndim
        return pl.BlockSpec(arr.shape, lambda i, _nd=nd: (0,) * _nd)

    kernel = make_fused_dcgru_kernel(S_num, K, D, U, M)

    extra = {}
    if donate_state:
        # When driving this cell inside a time-step scan, alias hx with the
        # output so the state buffer is updated in place.
        extra["input_output_aliases"] = {1: 0}

    new_h = pl.pallas_call(
        kernel,
        out_shape=jax.ShapeDtypeStruct((B * N, U), jnp.float32),
        grid=(B // TB,),
        in_specs=[row_spec(D),          # x_flat
                  row_spec(U),          # h_flat
                  full_spec(sup_k),     # supports (constant -> fetched once)
                  full_spec(w1x), full_spec(w1h),
                  full_spec(w2x), full_spec(w2h),
                  full_spec(b1), full_spec(b2)],
        out_specs=pl.BlockSpec((R, U), lambda i: (i, 0)),
        scratch_shapes=[pltpu.VMEM((R, M * D), jnp.float32),   # x-term stack
                        pltpu.VMEM((R, M * U), jnp.float32),   # h-term stack
                        pltpu.VMEM((R, M * U), jnp.float32)],  # r*h-term stack
        compiler_params=pltpu.CompilerParams(
            dimension_semantics=("parallel",)),
        **extra,
    )(x_flat, h_flat, sup_k, w1x, w1h, w2x, w2h, b1, b2)

    # (B*N, U) -> (B, N*U) is a no-op row-major reshape (free in the wrapper).
    return new_h.reshape(B, N * U)


# -----------------------------------------------------------------------------
# Pure-JAX reference (mirrors the PyTorch code line by line)
# -----------------------------------------------------------------------------
def gconv_ref(inputs, state, supports_list, W, b, N, K):
    B = inputs.shape[0]
    x_in = jnp.concatenate(
        [inputs.reshape(B, N, -1), state.reshape(B, N, -1)], axis=2)
    C = x_in.shape[2]
    x0 = jnp.transpose(x_in, (1, 2, 0)).reshape(N, C * B)
    xs = [x0]
    if K > 0:
        for S in supports_list:
            x1 = S @ x0
            xs.append(x1)
            for _ in range(2, K + 1):
                x2 = 2.0 * (S @ x1) - x0
                xs.append(x2)
                x1, x0 = x2, x1
    M = len(xs)
    x = jnp.stack(xs, axis=0).reshape(M, N, C, B)
    x = jnp.transpose(x, (3, 1, 2, 0)).reshape(B * N, C * M)
    O = W.shape[1]
    out = x @ W + b.reshape(-1)
    return out.reshape(B, N * O)


def dcgru_ref(inputs, hx, supports_list, W1, b1, W2, b2, N, U, K):
    value = jax.nn.sigmoid(gconv_ref(inputs, hx, supports_list, W1, b1, N, K))
    value = value.reshape(-1, N, 2 * U)
    r = value[..., :U].reshape(-1, N * U)
    u = value[..., U:].reshape(-1, N * U)
    c = jnp.tanh(gconv_ref(inputs, r * hx, supports_list, W2, b2, N, K))
    return u * hx + (1.0 - u) * c


# -----------------------------------------------------------------------------
# Setup helpers
# -----------------------------------------------------------------------------
def random_walk_T(adj):
    """(D^-1 A)^T — dense equivalent of calculate_random_walk_matrix(adj).T"""
    d = adj.sum(axis=1)
    d_inv = jnp.where(d > 0, 1.0 / d, 0.0)
    return (d_inv[:, None] * adj).T


def xavier_normal(key, shape):
    fan_in, fan_out = shape
    std = math.sqrt(2.0 / (fan_in + fan_out))
    return std * jax.random.normal(key, shape, dtype=jnp.float32)


if __name__ == "__main__":
    # Small, deterministic configuration (B=4 so the batch-tile grid axis is
    # non-trivial: batch_tile=2 -> grid=(2,) "parallel").
    B = 4            # batch
    N = 16           # num_nodes
    D = 4            # input_dim
    U = 32           # num_units (rnn hidden)
    K = 2            # max_diffusion_step
    NUM_SUP = 2      # dual_random_walk -> 2 supports
    C = D + U
    M = NUM_SUP * K + 1  # num_matrices

    key = jax.random.PRNGKey(0)
    k_adj, k_w1, k_w2, k_in, k_hx = jax.random.split(key, 5)

    # Dense non-negative adjacency -> dual random-walk supports.
    adj = jnp.abs(jax.random.normal(k_adj, (N, N), dtype=jnp.float32)) + 0.1
    supports_list = [random_walk_T(adj), random_walk_T(adj.T)]
    supports = jnp.stack(supports_list, axis=0)  # (2, N, N)

    # GCONV parameters (xavier_normal weights, constant biases) in the
    # ORIGINAL torch layout; the wrapper does all re-layout internally.
    W1 = xavier_normal(k_w1, (C * M, 2 * U))           # reset/update gates
    b1 = jnp.full((1, 2 * U), 1.0, dtype=jnp.float32)  # bias_start=1.0
    W2 = xavier_normal(k_w2, (C * M, U))               # candidate
    b2 = jnp.zeros((1, U), dtype=jnp.float32)          # bias_start=0.0

    # Inputs as the torch module expects them.
    inputs = jax.random.normal(k_in, (B, N * D), dtype=jnp.float32)
    hx = jax.random.normal(k_hx, (B, N * U), dtype=jnp.float32)

    out = dcgru_cell_forward(inputs, hx, supports, W1, b1, W2, b2,
                             num_nodes=N, num_units=U, max_diffusion_step=K,
                             batch_tile=2)
    out = jax.block_until_ready(out)
    assert out.shape == (B, N * U)

    # Correctness check against a line-by-line JAX port of the torch code.
    with jax.default_matmul_precision("highest"):
        ref = dcgru_ref(inputs, hx, supports_list, W1, b1, W2, b2, N, U, K)
    ref = jax.block_until_ready(ref)
    np.testing.assert_allclose(np.asarray(out), np.asarray(ref),
                               rtol=2e-3, atol=2e-3)

    print("KERNEL_OK")
</pallas_src>

<mosaic_0001>
module attributes {stable_mosaic.version = 11 : i64} {
  func.func @kernel(%arg0: i32, %arg1: memref<32x4xf32, #tpu.memory_space<vmem>>, %arg2: memref<32x32xf32, #tpu.memory_space<vmem>>, %arg3: memref<2x32x32xf32, #tpu.memory_space<vmem>>, %arg4: memref<20x64xf32, #tpu.memory_space<vmem>>, %arg5: memref<160x64xf32, #tpu.memory_space<vmem>>, %arg6: memref<20x32xf32, #tpu.memory_space<vmem>>, %arg7: memref<160x32xf32, #tpu.memory_space<vmem>>, %arg8: memref<1x64xf32, #tpu.memory_space<vmem>>, %arg9: memref<1x32xf32, #tpu.memory_space<vmem>>, %arg10: memref<32x32xf32, #tpu.memory_space<vmem>>, %arg11: memref<32x20xf32, #tpu.memory_space<vmem>>, %arg12: memref<32x160xf32, #tpu.memory_space<vmem>>, %arg13: memref<32x160xf32, #tpu.memory_space<vmem>>) attributes {dimension_semantics = [#tpu.dimension_semantics<parallel>], iteration_bounds = array<i64: 2>, scalar_prefetch = 0 : i64, scratch_operands = 3 : i64, tpu.core_type = #tpu.core_type<tc>, window_params = [{transform_indices = @transform_0, window_bounds = array<i64: 32, 4>}, {transform_indices = @transform_1, window_bounds = array<i64: 32, 32>}, {pipeline_mode = #tpu.pipeline_mode<synchronous>, transform_indices = @transform_2, window_bounds = array<i64: 2, 32, 32>}, {pipeline_mode = #tpu.pipeline_mode<synchronous>, transform_indices = @transform_3, window_bounds = array<i64: 20, 64>}, {pipeline_mode = #tpu.pipeline_mode<synchronous>, transform_indices = @transform_4, window_bounds = array<i64: 160, 64>}, {pipeline_mode = #tpu.pipeline_mode<synchronous>, transform_indices = @transform_5, window_bounds = array<i64: 20, 32>}, {pipeline_mode = #tpu.pipeline_mode<synchronous>, transform_indices = @transform_6, window_bounds = array<i64: 160, 32>}, {pipeline_mode = #tpu.pipeline_mode<synchronous>, transform_indices = @transform_7, window_bounds = array<i64: 1, 64>}, {pipeline_mode = #tpu.pipeline_mode<synchronous>, transform_indices = @transform_8, window_bounds = array<i64: 1, 32>}, {transform_indices = @transform_9, window_bounds = array<i64: 32, 32>}]} {
    %c0 = arith.constant 0 : index
    %c0_0 = arith.constant 0 : index
    %0 = vector.load %arg1[%c0, %c0_0] : memref<32x4xf32, #tpu.memory_space<vmem>>, vector<32x4xf32>
    %c0_1 = arith.constant 0 : index
    %c0_2 = arith.constant 0 : index
    %1 = vector.load %arg2[%c0_1, %c0_2] : memref<32x32xf32, #tpu.memory_space<vmem>>, vector<32x32xf32>
    %c0_3 = arith.constant 0 : index
    %c0_4 = arith.constant 0 : index
    %2 = vector.load %arg11[%c0_3, %c0_4] : memref<32x20xf32, #tpu.memory_space<vmem>>, vector<32x4xf32>
    tpu.vector_store %arg11[%c0_3, %c0_4], %0 {strides = array<i32>} : memref<32x20xf32, #tpu.memory_space<vmem>>, vector<32x4xf32>,
    %c0_5 = arith.constant 0 : index
    %c0_6 = arith.constant 0 : index
    %c0_7 = arith.constant 0 : index
    %3 = vector.load %arg3[%c0_5, %c0_6, %c0_7] : memref<2x32x32xf32, #tpu.memory_space<vmem>>, vector<1x32x32xf32>
    %4 = vector.shape_cast %3 : vector<1x32x32xf32> to vector<32x32xf32>
    %cst = arith.constant dense<0.000000e+00> : vector<32x4xf32>
    %5 = tpu.matmul %4, %0, %cst {dimension_numbers = #tpu.dot_dimension_numbers<[1], [0], [0], [1], [0, 0, 1, 1], [], []>} : vector<32x32xf32>, vector<32x4xf32>, vector<32x4xf32> -> vector<32x4xf32>
    %c0_8 = arith.constant 0 : index
    %c4 = arith.constant 4 : index
    %6 = vector.load %arg11[%c0_8, %c4] : memref<32x20xf32, #tpu.memory_space<vmem>>, vector<32x4xf32>
    tpu.vector_store %arg11[%c0_8, %c4], %5 {strides = array<i32>} : memref<32x20xf32, #tpu.memory_space<vmem>>, vector<32x4xf32>,
    %cst_9 = arith.constant dense<0.000000e+00> : vector<32x4xf32>
    %7 = tpu.matmul %4, %5, %cst_9 {dimension_numbers = #tpu.dot_dimension_numbers<[1], [0], [0], [1], [0, 0, 1, 1], [], []>} : vector<32x32xf32>, vector<32x4xf32>, vector<32x4xf32> -> vector<32x4xf32>
    %cst_10 = arith.constant 2.000000e+00 : f32
    %8 = vector.broadcast %cst_10 : f32 to vector<32x4xf32>
    %9 = arith.mulf %8, %7 : vector<32x4xf32>
    %10 = arith.subf %9, %0 : vector<32x4xf32>
    %c0_11 = arith.constant 0 : index
    %c8 = arith.constant 8 : index
    %11 = vector.load %arg11[%c0_11, %c8] : memref<32x20xf32, #tpu.memory_space<vmem>>, vector<32x4xf32>
    tpu.vector_store %arg11[%c0_11, %c8], %10 {strides = array<i32>} : memref<32x20xf32, #tpu.memory_space<vmem>>, vector<32x4xf32>,
    %c1 = arith.constant 1 : index
    %c0_12 = arith.constant 0 : index
    %c0_13 = arith.constant 0 : index
    %12 = vector.load %arg3[%c1, %c0_12, %c0_13] : memref<2x32x32xf32, #tpu.memory_space<vmem>>, vector<1x32x32xf32>
    %13 = vector.shape_cast %12 : vector<1x32x32xf32> to vector<32x32xf32>
    %cst_14 = arith.constant dense<0.000000e+00> : vector<32x4xf32>
    %14 = tpu.matmul %13, %5, %cst_14 {dimension_numbers = #tpu.dot_dimension_numbers<[1], [0], [0], [1], [0, 0, 1, 1], [], []>} : vector<32x32xf32>, vector<32x4xf32>, vector<32x4xf32> -> vector<32x4xf32>
    %c0_15 = arith.constant 0 : index
    %c12 = arith.constant 12 : index
    %15 = vector.load %arg11[%c0_15, %c12] : memref<32x20xf32, #tpu.memory_space<vmem>>, vector<32x4xf32>
    tpu.vector_store %arg11[%c0_15, %c12], %14 {strides = array<i32>} : memref<32x20xf32, #tpu.memory_space<vmem>>, vector<32x4xf32>,
    %cst_16 = arith.constant dense<0.000000e+00> : vector<32x4xf32>
    %16 = tpu.matmul %13, %14, %cst_16 {dimension_numbers = #tpu.dot_dimension_numbers<[1], [0], [0], [1], [0, 0, 1, 1], [], []>} : vector<32x32xf32>, vector<32x4xf32>, vector<32x4xf32> -> vector<32x4xf32>
    %cst_17 = arith.constant 2.000000e+00 : f32
    %17 = vector.broadcast %cst_17 : f32 to vector<32x4xf32>
    %18 = arith.mulf %17, %16 : vector<32x4xf32>
    %19 = arith.subf %18, %5 : vector<32x4xf32>
    %c0_18 = arith.constant 0 : index
    %c16 = arith.constant 16 : index
    %20 = vector.load %arg11[%c0_18, %c16] : memref<32x20xf32, #tpu.memory_space<vmem>>, vector<32x4xf32>
    tpu.vector_store %arg11[%c0_18, %c16], %19 {strides = array<i32>} : memref<32x20xf32, #tpu.memory_space<vmem>>, vector<32x4xf32>,
    %c0_19 = arith.constant 0 : index
    %c0_20 = arith.constant 0 : index
    %21 = vector.load %arg12[%c0_19, %c0_20] : memref<32x160xf32, #tpu.memory_space<vmem>>, vector<32x32xf32>
    tpu.vector_store %arg12[%c0_19, %c0_20], %1 {strides = array<i32>} : memref<32x160xf32, #tpu.memory_space<vmem>>, vector<32x32xf32>,
    %c0_21 = arith.constant 0 : index
    %c0_22 = arith.constant 0 : index
    %c0_23 = arith.constant 0 : index
    %22 = vector.load %arg3[%c0_21, %c0_22, %c0_23] : memref<2x32x32xf32, #tpu.memory_space<vmem>>, vector<1x32x32xf32>
    %23 = vector.shape_cast %22 : vector<1x32x32xf32> to vector<32x32xf32>
    %cst_24 = arith.constant dense<0.000000e+00> : vector<32x32xf32>
    %24 = tpu.matmul %23, %1, %cst_24 {dimension_numbers = #tpu.dot_dimension_numbers<[1], [0], [0], [1], [0, 0, 1, 1], [], []>} : vector<32x32xf32>, vector<32x32xf32>, vector<32x32xf32> -> vector<32x32xf32>
    %c0_25 = arith.constant 0 : index
    %c32 = arith.constant 32 : index
    %25 = vector.load %arg12[%c0_25, %c32] : memref<32x160xf32, #tpu.memory_space<vmem>>, vector<32x32xf32>
    tpu.vector_store %arg12[%c0_25, %c32], %24 {strides = array<i32>} : memref<32x160xf32, #tpu.memory_space<vmem>>, vector<32x32xf32>,
    %cst_26 = arith.constant dense<0.000000e+00> : vector<32x32xf32>
    %26 = tpu.matmul %23, %24, %cst_26 {dimension_numbers = #tpu.dot_dimension_numbers<[1], [0], [0], [1], [0, 0, 1, 1], [], []>} : vector<32x32xf32>, vector<32x32xf32>, vector<32x32xf32> -> vector<32x32xf32>
    %cst_27 = arith.constant 2.000000e+00 : f32
    %27 = vector.broadcast %cst_27 : f32 to vector<32x32xf32>
    %28 = arith.mulf %27, %26 : vector<32x32xf32>
    %29 = arith.subf %28, %1 : vector<32x32xf32>
    %c0_28 = arith.constant 0 : index
    %c64 = arith.constant 64 : index
    %30 = vector.load %arg12[%c0_28, %c64] : memref<32x160xf32, #tpu.memory_space<vmem>>, vector<32x32xf32>
    tpu.vector_store %arg12[%c0_28, %c64], %29 {strides = array<i32>} : memref<32x160xf32, #tpu.memory_space<vmem>>, vector<32x32xf32>,
    %c1_29 = arith.constant 1 : index
    %c0_30 = arith.constant 0 : index
    %c0_31 = arith.constant 0 : index
    %31 = vector.load %arg3[%c1_29, %c0_30, %c0_31] : memref<2x32x32xf32, #tpu.memory_space<vmem>>, vector<1x32x32xf32>
    %32 = vector.shape_cast %31 : vector<1x32x32xf32> to vector<32x32xf32>
    %cst_32 = arith.constant dense<0.000000e+00> : vector<32x32xf32>
    %33 = tpu.matmul %32, %24, %cst_32 {dimension_numbers = #tpu.dot_dimension_numbers<[1], [0], [0], [1], [0, 0, 1, 1], [], []>} : vector<32x32xf32>, vector<32x32xf32>, vector<32x32xf32> -> vector<32x32xf32>
    %c0_33 = arith.constant 0 : index
    %c96 = arith.constant 96 : index
    %34 = vector.load %arg12[%c0_33, %c96] : memref<32x160xf32, #tpu.memory_space<vmem>>, vector<32x32xf32>
    tpu.vector_store %arg12[%c0_33, %c96], %33 {strides = array<i32>} : memref<32x160xf32, #tpu.memory_space<vmem>>, vector<32x32xf32>,
    %cst_34 = arith.constant dense<0.000000e+00> : vector<32x32xf32>
    %35 = tpu.matmul %32, %33, %cst_34 {dimension_numbers = #tpu.dot_dimension_numbers<[1], [0], [0], [1], [0, 0, 1, 1], [], []>} : vector<32x32xf32>, vector<32x32xf32>, vector<32x32xf32> -> vector<32x32xf32>
    %cst_35 = arith.constant 2.000000e+00 : f32
    %36 = vector.broadcast %cst_35 : f32 to vector<32x32xf32>
    %37 = arith.mulf %36, %35 : vector<32x32xf32>
    %38 = arith.subf %37, %24 : vector<32x32xf32>
    %c0_36 = arith.constant 0 : index
    %c128 = arith.constant 128 : index
    %39 = vector.load %arg12[%c0_36, %c128] : memref<32x160xf32, #tpu.memory_space<vmem>>, vector<32x32xf32>
    tpu.vector_store %arg12[%c0_36, %c128], %38 {strides = array<i32>} : memref<32x160xf32, #tpu.memory_space<vmem>>, vector<32x32xf32>,
    %c0_37 = arith.constant 0 : index
    %c0_38 = arith.constant 0 : index
    %40 = vector.load %arg11[%c0_37, %c0_38] : memref<32x20xf32, #tpu.memory_space<vmem>>, vector<32x20xf32>
    %c0_39 = arith.constant 0 : index
    %c0_40 = arith.constant 0 : index
    %41 = vector.load %arg4[%c0_39, %c0_40] : memref<20x64xf32, #tpu.memory_space<vmem>>, vector<20x64xf32>
    %cst_41 = arith.constant dense<0.000000e+00> : vector<32x64xf32>
    %42 = tpu.matmul %40, %41, %cst_41 {dimension_numbers = #tpu.dot_dimension_numbers<[1], [0], [0], [1], [0, 0, 1, 1], [], []>} : vector<32x20xf32>, vector<20x64xf32>, vector<32x64xf32> -> vector<32x64xf32>
    %c0_42 = arith.constant 0 : index
    %c0_43 = arith.constant 0 : index
    %43 = vector.load %arg12[%c0_42, %c0_43] : memref<32x160xf32, #tpu.memory_space<vmem>>, vector<32x160xf32>
    %c0_44 = arith.constant 0 : index
    %c0_45 = arith.constant 0 : index
    %44 = vector.load %arg5[%c0_44, %c0_45] : memref<160x64xf32, #tpu.memory_space<vmem>>, vector<160x64xf32>
    %cst_46 = arith.constant dense<0.000000e+00> : vector<32x64xf32>
    %45 = tpu.matmul %43, %44, %cst_46 {dimension_numbers = #tpu.dot_dimension_numbers<[1], [0], [0], [1], [0, 0, 1, 1], [], []>} : vector<32x160xf32>, vector<160x64xf32>, vector<32x64xf32> -> vector<32x64xf32>
    %46 = arith.addf %42, %45 : vector<32x64xf32>
    %c0_47 = arith.constant 0 : index
    %c0_48 = arith.constant 0 : index
    %47 = vector.load %arg8[%c0_47, %c0_48] : memref<1x64xf32, #tpu.memory_space<vmem>>, vector<1x64xf32>
    %48 = vector.broadcast %47 : vector<1x64xf32> to vector<32x64xf32>
    %49 = arith.addf %46, %48 : vector<32x64xf32>
    %50 = arith.negf %49 : vector<32x64xf32>
    %51 = math.exp %50 : vector<32x64xf32>
    %cst_49 = arith.constant 1.000000e+00 : f32
    %52 = vector.broadcast %cst_49 : f32 to vector<32x64xf32>
    %53 = arith.addf %52, %51 : vector<32x64xf32>
    %54 = arith.divf %52, %53 : vector<32x64xf32>
    %55 = vector.extract_strided_slice %54 {offsets = [0, 0], sizes = [32, 32], strides = [1, 1]} : vector<32x64xf32> to vector<32x32xf32>
    %56 = vector.extract_strided_slice %54 {offsets = [0, 32], sizes = [32, 32], strides = [1, 1]} : vector<32x64xf32> to vector<32x32xf32>
    %57 = arith.mulf %55, %1 : vector<32x32xf32>
    %c0_50 = arith.constant 0 : index
    %c0_51 = arith.constant 0 : index
    %58 = vector.load %arg13[%c0_50, %c0_51] : memref<32x160xf32, #tpu.memory_space<vmem>>, vector<32x32xf32>
    tpu.vector_store %arg13[%c0_50, %c0_51], %57 {strides = array<i32>} : memref<32x160xf32, #tpu.memory_space<vmem>>, vector<32x32xf32>,
    %c0_52 = arith.constant 0 : index
    %c0_53 = arith.constant 0 : index
    %c0_54 = arith.constant 0 : index
    %59 = vector.load %arg3[%c0_52, %c0_53, %c0_54] : memref<2x32x32xf32, #tpu.memory_space<vmem>>, vector<1x32x32xf32>
    %60 = vector.shape_cast %59 : vector<1x32x32xf32> to vector<32x32xf32>
    %cst_55 = arith.constant dense<0.000000e+00> : vector<32x32xf32>
    %61 = tpu.matmul %60, %57, %cst_55 {dimension_numbers = #tpu.dot_dimension_numbers<[1], [0], [0], [1], [0, 0, 1, 1], [], []>} : vector<32x32xf32>, vector<32x32xf32>, vector<32x32xf32> -> vector<32x32xf32>
    %c0_56 = arith.constant 0 : index
    %c32_57 = arith.constant 32 : index
    %62 = vector.load %arg13[%c0_56, %c32_57] : memref<32x160xf32, #tpu.memory_space<vmem>>, vector<32x32xf32>
    tpu.vector_store %arg13[%c0_56, %c32_57], %61 {strides = array<i32>} : memref<32x160xf32, #tpu.memory_space<vmem>>, vector<32x32xf32>,
    %cst_58 = arith.constant dense<0.000000e+00> : vector<32x32xf32>
    %63 = tpu.matmul %60, %61, %cst_58 {dimension_numbers = #tpu.dot_dimension_numbers<[1], [0], [0], [1], [0, 0, 1, 1], [], []>} : vector<32x32xf32>, vector<32x32xf32>, vector<32x32xf32> -> vector<32x32xf32>
    %cst_59 = arith.constant 2.000000e+00 : f32
    %64 = vector.broadcast %cst_59 : f32 to vector<32x32xf32>
    %65 = arith.mulf %64, %63 : vector<32x32xf32>
    %66 = arith.subf %65, %57 : vector<32x32xf32>
    %c0_60 = arith.constant 0 : index
    %c64_61 = arith.constant 64 : index
    %67 = vector.load %arg13[%c0_60, %c64_61] : memref<32x160xf32, #tpu.memory_space<vmem>>, vector<32x32xf32>
    tpu.vector_store %arg13[%c0_60, %c64_61], %66 {strides = array<i32>} : memref<32x160xf32, #tpu.memory_space<vmem>>, vector<32x32xf32>,
    %c1_62 = arith.constant 1 : index
    %c0_63 = arith.constant 0 : index
    %c0_64 = arith.constant 0 : index
    %68 = vector.load %arg3[%c1_62, %c0_63, %c0_64] : memref<2x32x32xf32, #tpu.memory_space<vmem>>, vector<1x32x32xf32>
    %69 = vector.shape_cast %68 : vector<1x32x32xf32> to vector<32x32xf32>
    %cst_65 = arith.constant dense<0.000000e+00> : vector<32x32xf32>
    %70 = tpu.matmul %69, %61, %cst_65 {dimension_numbers = #tpu.dot_dimension_numbers<[1], [0], [0], [1], [0, 0, 1, 1], [], []>} : vector<32x32xf32>, vector<32x32xf32>, vector<32x32xf32> -> vector<32x32xf32>
    %c0_66 = arith.constant 0 : index
    %c96_67 = arith.constant 96 : index
    %71 = vector.load %arg13[%c0_66, %c96_67] : memref<32x160xf32, #tpu.memory_space<vmem>>, vector<32x32xf32>
    tpu.vector_store %arg13[%c0_66, %c96_67], %70 {strides = array<i32>} : memref<32x160xf32, #tpu.memory_space<vmem>>, vector<32x32xf32>,
    %cst_68 = arith.constant dense<0.000000e+00> : vector<32x32xf32>
    %72 = tpu.matmul %69, %70, %cst_68 {dimension_numbers = #tpu.dot_dimension_numbers<[1], [0], [0], [1], [0, 0, 1, 1], [], []>} : vector<32x32xf32>, vector<32x32xf32>, vector<32x32xf32> -> vector<32x32xf32>
    %cst_69 = arith.constant 2.000000e+00 : f32
    %73 = vector.broadcast %cst_69 : f32 to vector<32x32xf32>
    %74 = arith.mulf %73, %72 : vector<32x32xf32>
    %75 = arith.subf %74, %61 : vector<32x32xf32>
    %c0_70 = arith.constant 0 : index
    %c128_71 = arith.constant 128 : index
    %76 = vector.load %arg13[%c0_70, %c128_71] : memref<32x160xf32, #tpu.memory_space<vmem>>, vector<32x32xf32>
    tpu.vector_store %arg13[%c0_70, %c128_71], %75 {strides = array<i32>} : memref<32x160xf32, #tpu.memory_space<vmem>>, vector<32x32xf32>,
    %c0_72 = arith.constant 0 : index
    %c0_73 = arith.constant 0 : index
    %77 = vector.load %arg6[%c0_72, %c0_73] : memref<20x32xf32, #tpu.memory_space<vmem>>, vector<20x32xf32>
    %cst_74 = arith.constant dense<0.000000e+00> : vector<32x32xf32>
    %78 = tpu.matmul %40, %77, %cst_74 {dimension_numbers = #tpu.dot_dimension_numbers<[1], [0], [0], [1], [0, 0, 1, 1], [], []>} : vector<32x20xf32>, vector<20x32xf32>, vector<32x32xf32> -> vector<32x32xf32>
    %c0_75 = arith.constant 0 : index
    %c0_76 = arith.constant 0 : index
    %79 = vector.load %arg13[%c0_75, %c0_76] : memref<32x160xf32, #tpu.memory_space<vmem>>, vector<32x160xf32>
    %c0_77 = arith.constant 0 : index
    %c0_78 = arith.constant 0 : index
    %80 = vector.load %arg7[%c0_77, %c0_78] : memref<160x32xf32, #tpu.memory_space<vmem>>, vector<160x32xf32>
    %cst_79 = arith.constant dense<0.000000e+00> : vector<32x32xf32>
    %81 = tpu.matmul %79, %80, %cst_79 {dimension_numbers = #tpu.dot_dimension_numbers<[1], [0], [0], [1], [0, 0, 1, 1], [], []>} : vector<32x160xf32>, vector<160x32xf32>, vector<32x32xf32> -> vector<32x32xf32>
    %82 = arith.addf %78, %81 : vector<32x32xf32>
    %c0_80 = arith.constant 0 : index
    %c0_81 = arith.constant 0 : index
    %83 = vector.load %arg9[%c0_80, %c0_81] : memref<1x32xf32, #tpu.memory_space<vmem>>, vector<1x32xf32>
    %84 = vector.broadcast %83 : vector<1x32xf32> to vector<32x32xf32>
    %85 = arith.addf %82, %84 : vector<32x32xf32>
    %86 = math.tanh %85 : vector<32x32xf32>
    %87 = arith.mulf %56, %1 : vector<32x32xf32>
    %cst_82 = arith.constant 1.000000e+00 : f32
    %88 = vector.broadcast %cst_82 : f32 to vector<32x32xf32>
    %89 = arith.subf %88, %56 : vector<32x32xf32>
    %90 = arith.mulf %89, %86 : vector<32x32xf32>
    %91 = arith.addf %87, %90 : vector<32x32xf32>
    %c0_83 = arith.constant 0 : index
    %c0_84 = arith.constant 0 : index
    %92 = vector.load %arg10[%c0_83, %c0_84] : memref<32x32xf32, #tpu.memory_space<vmem>>, vector<32x32xf32>
    tpu.vector_store %arg10[%c0_83, %c0_84], %91 {strides = array<i32>} : memref<32x32xf32, #tpu.memory_space<vmem>>, vector<32x32xf32>,
    return
  }
  func.func @transform_0(%arg0: i32) -> (i32, i32) {
    %c0_i32 = arith.constant 0 : i32
    %c0_i32_0 = arith.constant 0 : i32
    return %arg0, %c0_i32 : i32, i32
  }
  func.func @transform_1(%arg0: i32) -> (i32, i32) {
    %c0_i32 = arith.constant 0 : i32
    %c0_i32_0 = arith.constant 0 : i32
    return %arg0, %c0_i32 : i32, i32
  }
  func.func @transform_2(%arg0: i32) -> (i32, i32, i32) {
    %c0_i32 = arith.constant 0 : i32
    %c0_i32_0 = arith.constant 0 : i32
    %c0_i32_1 = arith.constant 0 : i32
    %c0_i32_2 = arith.constant 0 : i32
    return %c0_i32, %c0_i32_0, %c0_i32_1 : i32, i32, i32
  }
  func.func @transform_3(%arg0: i32) -> (i32, i32) {
    %c0_i32 = arith.constant 0 : i32
    %c0_i32_0 = arith.constant 0 : i32
    %c0_i32_1 = arith.constant 0 : i32
    return %c0_i32, %c0_i32_0 : i32, i32
  }
  func.func @transform_4(%arg0: i32) -> (i32, i32) {
    %c0_i32 = arith.constant 0 : i32
    %c0_i32_0 = arith.constant 0 : i32
    %c0_i32_1 = arith.constant 0 : i32
    return %c0_i32, %c0_i32_0 : i32, i32
  }
  func.func @transform_5(%arg0: i32) -> (i32, i32) {
    %c0_i32 = arith.constant 0 : i32
    %c0_i32_0 = arith.constant 0 : i32
    %c0_i32_1 = arith.constant 0 : i32
    return %c0_i32, %c0_i32_0 : i32, i32
  }
  func.func @transform_6(%arg0: i32) -> (i32, i32) {
    %c0_i32 = arith.constant 0 : i32
    %c0_i32_0 = arith.constant 0 : i32
    %c0_i32_1 = arith.constant 0 : i32
    return %c0_i32, %c0_i32_0 : i32, i32
  }
  func.func @transform_7(%arg0: i32) -> (i32, i32) {
    %c0_i32 = arith.constant 0 : i32
    %c0_i32_0 = arith.constant 0 : i32
    %c0_i32_1 = arith.constant 0 : i32
    return %c0_i32, %c0_i32_0 : i32, i32
  }
  func.func @transform_8(%arg0: i32) -> (i32, i32) {
    %c0_i32 = arith.constant 0 : i32
    %c0_i32_0 = arith.constant 0 : i32
    %c0_i32_1 = arith.constant 0 : i32
    return %c0_i32, %c0_i32_0 : i32, i32
  }
  func.func @transform_9(%arg0: i32) -> (i32, i32) {
    %c0_i32 = arith.constant 0 : i32
    %c0_i32_0 = arith.constant 0 : i32
    return %arg0, %c0_i32 : i32, i32
  }
}

</mosaic_0001>

<bundles_post_ra>
// kernel: tpu_custom_call.1
= control target key start
LH: loop header
LB: loop body
LE: loop exit
PB: predicated region body
PF: predicated region fallthrough
CT: control target
= control target key end

     0   :  { %s2905_s30 = smov 0   ;;  %s3599_s0 = inlined_call_operand.vmem [shape: f32[64,4], index: 0, kind: input, shape index: {}]   ;;  %s3600_s1 = inlined_call_operand.vmem [shape: f32[64,32], index: 1, kind: input, shape index: {}]   ;;  %s3601_s2 = inlined_call_operand.vmem [shape: f32[2,32,32], index: 2, kind: input, shape index: {}]   ;;  %s3602_s3 = inlined_call_operand.vmem [shape: f32[20,64], index: 3, kind: input, shape index: {}]   ;;  %s3603_s4 = inlined_call_operand.vmem [shape: f32[160,64], index: 4, kind: input, shape index: {}]   ;;  %s3604_s5 = inlined_call_operand.vmem [shape: f32[20,32], index: 5, kind: input, shape index: {}]   ;;  %s3605_s6 = inlined_call_operand.vmem [shape: f32[160,32], index: 6, kind: input, shape index: {}]   ;;  %s3606_s7 = inlined_call_operand.vmem [shape: f32[1,64], index: 7, kind: input, shape index: {}]   ;;  %s3607_s8 = inlined_call_operand.vmem [shape: f32[1,32], index: 8, kind: input, shape index: {}]   ;;  %s3608_s9 = inlined_call_operand.vmem [shape: f32[64,32], index: 9, kind: output, shape index: {}]  }
   0x1 LB: > { %s2400_s10 = sadd.s32 4294967295, %s2845_s30   ;;  %p2404_p0 = scmp.ge.s32.totalorder %s2845_s30, 1  ;;  %s2845_s30 = sphi %s2905_s30, %s19_s30  }
   0x2   : > { %p299_p1 = scmp.lt.s32.totalorder %s2845_s30, 3 }
   0x4   : > { %p300_p2 = pnand %p2404_p0, %p299_p1 }
   0x5   : > { %s2405_s11 = sshll.u32 (!%p300_p2), %s2400_s10, 2  ;;  %s2847_s29 = smov (!%p300_p2), 32  }
   0x6   : > { %303 = sbr.rel (%p300_p2) target bundleno = 2116 (0x844), region = 56  ;;  %p341_p3 = scmp.lt.s32.totalorder (!%p300_p2), %s2405_s11, 7 }
   0x7   : > { %s2848_s10 = smov (!%p300_p2), 4   ;;  %s2849_s18 = smov (!%p300_p2), 96  }
   0x8   : > { %s2850_s19 = smov (!%p300_p2), 8   ;;  %s2853_s27 = smov (!%p300_p2), 16  }
   0xb   : > { %v2916_v0 = vld [vmem:[%s3601_s2] sm:$0xff]  ;;  %vm375_vm0 = vcmask 261120   ;;  %s3610_s11 = smov (!%p341_p3, %s2405_s11), 7  ;;  %v2971_v9 = vld [vmem:[%s3601_s2 + $0x8] sm:$0xff]  ;;  %v2978_v10 = vld [vmem:[%s3601_s2 + $0x10] sm:$0xff]  ;;  %vm366_vm1 = vcmask 31744  }
   0xc   : > { %2615 = vmatprep.mubr.msk.f32.mxu1 %vm375_vm0, %v2916_v0  ;;  %2671 = vmatprep.mubr.msk.f32.mxu0 %vm375_vm0, %v2916_v0  ;;  %s2922_s14 = sshll.u32 %s3610_s11, 3  ;;  %v2993_v11 = vld [vmem:[%s3601_s2 + $0x18] sm:$0xff]  ;;  %v3004_v12 = vld [vmem:[%s3601_s2 + $0x20] sm:$0xff]  ;;  %v3052_v21 = vld [vmem:[%s3601_s2 + $0x28] sm:$0xff]  ;;  %vm966_vm2 = vcmask 523520   ;;  %vm489_vm3 = vcmask 64544  }
   0xd   : > { %s344_s17 = scalar_lea.vmem %s3599_s0, %s2922_s14  ;;  %s350_s20 = scalar_lea.vmem %s3600_s1, %s2922_s14  ;;  %v3064_v22 = vld [vmem:[%s3601_s2 + $0x30] sm:$0xff]  ;;  %v3073_v23 = vld [vmem:[%s3601_s2 + $0x38] sm:$0xff]  ;;  %vm603_vm4 = vcmask 97344   ;;  %v2852_v55 = vmov 0.0   ;;  %v1332_v58 = vld [vmem:[%s3603_s4 + $0x68] sm:$0xff]  ;;  %vm726_vm5 = vcmask 130144  }
   0xe   : > { %v2932_v1 = vld [vmem:[%s344_s17 + $0x18] sm:$0xff]  ;;  %v2936_v3 = vld [vmem:[%s344_s17 + $0x10] sm:$0xff]  ;;  %v2942_v5 = vld [vmem:[%s350_s20 + $0x8] sm:$0xff]  ;;  %vm1449_vm6 = vcmask 1043456   ;;  %vm840_vm7 = vcmask 162944   ;;  %vm1080_vm8 = vcmask 785920  }
   0xf   : > { %v2934_v2 = vld [vmem:[%s350_s20 + $0x18] sm:$0xff]  ;;  %2607 = vmatprep.subr.mxu1 %v2932_v1  ;;  %v2940_v4 = vld [vmem:[%s350_s20 + $0x10] sm:$0xff]  ;;  %v2948_v6 = vld [vmem:[%s344_s17 + $0x8] sm:$0xff]  ;;  %846 = vst.msk [vmem:[#allocation3 + $0x10] sm:$0xff] %vm375_vm0, %v2942_v5  ;;  %vm1202_vm9 = vcmask 1048320   ;;  %vm1436_vm10 = vcmask 162816  }
  0x10   : > { %2663 = vmatprep.subr.mxu0 %v2934_v2  ;;  %848 = vst.msk [vmem:[#allocation3 + $0x30] sm:$0xff] %vm375_vm0, %v2934_v2  ;;  %2608 = vmatpush3.msra.mxu1 %v2932_v1  ;;  %v2950_v7 = vld [vmem:[%s350_s20] sm:$0xff]  ;;  %847 = vst.msk [vmem:[#allocation3 + $0x20] sm:$0xff] %vm375_vm0, %v2940_v4  ;;  %s2851_s20 = smov 12   ;;  %v1334_v53 = vld [vmem:[%s3603_s4 + $0x78] sm:$0xff] }
  0x11   : > { %2664 = vmatpush3.msra.mxu0 %v2934_v2  ;;  %2609 = vmatprep.subr.mxu1 %v2936_v3  ;;  %845 = vst.msk [vmem:[#allocation3] sm:$0xff] %vm375_vm0, %v2950_v7  ;;  %v2962_v8 = vld [vmem:[%s344_s17] sm:$0xff]  ;;  %v1333_v56 = vld [vmem:[%s3603_s4 + $0x70] sm:$0xff]  ;;  %v1330_v62 = vld [vmem:[%s3603_s4 + $0x58] sm:$0xff] }
  0x12   : > { %2665 = vmatprep.subr.mxu0 %v2940_v4  ;;  %2610 = vmatpush3.msra.mxu1 %v2936_v3  ;;  %368 = vst.msk [vmem:[#allocation2 + $0x8] sm:$0xff] %vm366_vm1, %v2948_v6  ;;  %367 = vst.msk [vmem:[#allocation2] sm:$0xff] %vm366_vm1, %v2962_v8  ;;  %v1331_v60 = vld [vmem:[%s3603_s4 + $0x60] sm:$0xff] }
  0x13   : > { %2666 = vmatpush3.msra.mxu0 %v2940_v4  ;;  %2611 = vmatprep.subr.mxu1 %v2948_v6  ;;  %369 = vst.msk [vmem:[#allocation2 + $0x10] sm:$0xff] %vm366_vm1, %v2936_v3  ;;  %370 = vst.msk [vmem:[#allocation2 + $0x18] sm:$0xff] %vm366_vm1, %v2932_v1 }
  0x14   : > { %2667 = vmatprep.subr.mxu0 %v2942_v5  ;;  %2612 = vmatpush3.msra.mxu1 %v2948_v6 }
  0x15   : > { %2668 = vmatpush3.msra.mxu0 %v2942_v5  ;;  %2613 = vmatprep.subr.mxu1 %v2962_v8 }
  0x16   : > { %2669 = vmatprep.subr.mxu0 %v2950_v7  ;;  %2614 = vmatpush3.msra.mxu1 %v2962_v8 }
  0x17   : > { %2670 = vmatpush3.msra.mxu0 %v2950_v7  ;;  %2616 = vmatmul.mubr.msk.f32.vlgmr.msra.gmra.mxu1 %vm375_vm0, %v2971_v9 }
  0x18   : > { %2672 = vmatmul.mubr.msk.f32.vlgmr.msra.gmra.mxu0 %vm375_vm0, %v2971_v9  ;;  %2618 = vmatprep.mubr.msk.f32.mxu1 %vm375_vm0, %v2978_v10 }
  0x19   : > { %2674 = vmatprep.mubr.msk.f32.mxu0 %vm375_vm0, %v2978_v10 }
  0x1b   : > { %2619 = vmatmul.mubr.msk.f32.gmra.mxu1 %vm375_vm0, %v2993_v11 }
  0x1c   : > { %2675 = vmatmul.mubr.msk.f32.gmra.mxu0 %vm375_vm0, %v2993_v11  ;;  %2629 = vmatprep.mubr.msk.f32.mxu1 %vm375_vm0, %v2916_v0 }
  0x1d   : > { %2699 = vmatprep.mubr.msk.f32.mxu0 %vm375_vm0, %v3004_v12 }
  0xd7   : > { %v3012_v13 = vpop.f32.mrf.mxu1 }
  0xd8   : > { %v3014_v14 = vpop.f32.mrf.mxu0 }
  0xd9   : > { %956 = vrot.lane.b32.xlu1 %v3014_v14, %s2847_s29  ;;  %v3018_v15 = vpop.f32.mrf.mxu1 }
  0xda   : > { %v3020_v16 = vpop.f32.mrf.mxu0 }
  0xdb   : > { %954 = vrot.lane.b32.xlu0 %v3020_v16, %s2847_s29  ;;  %v3024_v17 = vpop.f32.mrf.mxu1 }
  0xdc   : > { %v3026_v18 = vpop.f32.mrf.mxu0  ;;  %2621 = vmatprep.subr.mxu1 %v3024_v17 }
  0xdd   : > { %2691 = vmatprep.subr.mxu0 %v3026_v18  ;;  %479 = vrot.lane.b32.xlu1 %v3012_v13, %s2848_s10  ;;  %v3032_v19 = vpop.f32.mrf.mxu1 }
  0xde   : > { %v3034_v20 = vpop.f32.mrf.mxu0  ;;  %2692 = vmatpush3.msra.mxu0 %v3026_v18  ;;  %2622 = vmatpush3.msra.mxu1 %v3024_v17 }
  0xdf   : > { %2693 = vmatprep.subr.mxu0 %v3034_v20  ;;  %483 = vrot.lane.b32.xlu0 %v3024_v17, %s2848_s10 }
  0xe0   : > { %2623 = vmatprep.subr.mxu1 %v3032_v19  ;;  %2694 = vmatpush3.msra.mxu0 %v3034_v20 }
  0xe1   : > { %2624 = vmatpush3.msra.mxu1 %v3032_v19  ;;  %2695 = vmatprep.subr.mxu0 %v3014_v14 }
  0xe2   : > { %477 = vrot.lane.b32.xlu1 %v3018_v15, %s2848_s10  ;;  %2625 = vmatprep.subr.mxu1 %v3012_v13 }
  0xe3   : > { %2696 = vmatpush3.msra.mxu0 %v3014_v14  ;;  %2626 = vmatpush3.msra.mxu1 %v3012_v13 }
  0xe4   : > { %2697 = vmatprep.subr.mxu0 %v3020_v16  ;;  %2627 = vmatprep.subr.mxu1 %v3018_v15 }
  0xe5   : > { %2698 = vmatpush3.msra.mxu0 %v3020_v16  ;;  %2628 = vmatpush3.msra.mxu1 %v3018_v15 }
  0xe6   : > { %2700 = vmatmul.mubr.msk.f32.vlgmr.msra.gmra.mxu0 %vm375_vm0, %v3052_v21  ;;  %958 = vrot.lane.b32.xlu1 %v3034_v20, %s2847_s29 }
  0xe7   : > { %2630 = vmatmul.mubr.msk.f32.vlgmr.msra.gmra.mxu1 %vm375_vm0, %v2971_v9  ;;  %2635 = vmatprep.subr.mxu1 %v3024_v17 }
  0xe8   : > { %2632 = vmatprep.mubr.msk.f32.mxu1 %vm375_vm0, %v2978_v10  ;;  %2636 = vmatpush3.msra.mxu1 %v3024_v17 }
  0xe9   : > { %2702 = vmatprep.mubr.msk.f32.mxu0 %vm375_vm0, %v3064_v22  ;;  %2637 = vmatprep.subr.mxu1 %v3032_v19 }
  0xea   : > { %2703 = vmatmul.mubr.msk.f32.gmra.mxu0 %vm375_vm0, %v3073_v23  ;;  %2638 = vmatpush3.msra.mxu1 %v3032_v19 }
  0xeb   : > { %481 = vrot.lane.b32.xlu1 %v3032_v19, %s2848_s10  ;;  %2633 = vmatmul.mubr.msk.f32.gmra.mxu1 %vm375_vm0, %v2993_v11 }
  0xec   : > { %2639 = vmatprep.subr.mxu1 %v3012_v13  ;;  %2643 = vmatprep.mubr.msk.f32.mxu1 %vm375_vm0, %v3004_v12 }
  0xed   : > { %2640 = vmatpush3.msra.mxu1 %v3012_v13  ;;  %1351 = vmatprep.subr.mxu0 %v2852_v55 }
  0xee   : > { %2641 = vmatprep.subr.mxu1 %v3018_v15  ;;  %1352 = vmatpush1.msra.mxu0 %v1334_v53 }
  0xef   : > { %2642 = vmatpush3.msra.mxu1 %v3018_v15  ;;  %1353 = vmatprep.subr.mxu0 %v2852_v55 }
  0xf0   : > { %2644 = vmatmul.mubr.msk.f32.vlgmr.msra.gmra.mxu1 %vm375_vm0, %v3052_v21  ;;  %1354 = vmatpush1.msra.mxu0 %v1333_v56  ;;  %v1335_v56 = vld [vmem:[%s3603_s4 + $0x80] sm:$0xff] }
  0xf1   : > { %2646 = vmatprep.mubr.msk.f32.mxu1 %vm375_vm0, %v3064_v22  ;;  %1355 = vmatprep.subr.mxu0 %v2852_v55 }
  0xf2   : > { %1356 = vmatpush1.msra.mxu0 %v1332_v58 }
  0xf3   : > { %1357 = vmatprep.subr.mxu0 %v2852_v55 }
  0xf4   : > { %2647 = vmatmul.mubr.msk.f32.gmra.mxu1 %vm375_vm0, %v3073_v23  ;;  %1358 = vmatpush1.msra.mxu0 %v1331_v60 }
  0xf5   : > { %2657 = vmatprep.mubr.msk.f32.mxu1 %vm375_vm0, %v3004_v12  ;;  %1359 = vmatprep.subr.mxu0 %v2852_v55 }
  0xf6   : > { %1360 = vmatpush1.msra.mxu0 %v1330_v62 }
  0xf7   : > { %1361 = vmatprep.subr.mxu0 %v2852_v55 }
 0x14b   : > { %v957_v24 = vpop.permute.xlu1 %956 }
 0x14c   : > { %968 = vst.msk [vmem:[#allocation3 + $0x10] sm:$0xff] %vm966_vm2, %v957_v24  ;;  %v1327_v24 = vld [vmem:[%s3603_s4 + $0x40] sm:$0xff] }
 0x14d   : > { %v955_v25 = vpop.permute.xlu0 %954 }
 0x14e   : > { %967 = vst.msk [vmem:[#allocation3] sm:$0xff] %vm966_vm2, %v955_v25 }
 0x14f   : > { %v480_v26 = vpop.permute.xlu1 %479 }
 0x150   : > { %491 = vst.msk [vmem:[#allocation2 + $0x8] sm:$0xff] %vm489_vm3, %v480_v26  ;;  %v1326_v26 = vld [vmem:[%s3603_s4 + $0x38] sm:$0xff] }
 0x151   : > { %v484_v27 = vpop.permute.xlu0 %483 }
 0x152   : > { %493 = vst.msk [vmem:[#allocation2 + $0x18] sm:$0xff] %vm489_vm3, %v484_v27  ;;  %v1325_v27 = vld [vmem:[%s3603_s4 + $0x30] sm:$0xff] }
 0x154   : > { %v478_v28 = vpop.permute.xlu1 %477 }
 0x155   : > { %490 = vst.msk [vmem:[#allocation2] sm:$0xff] %vm489_vm3, %v478_v28  ;;  %v1324_v28 = vld [vmem:[%s3603_s4 + $0x28] sm:$0xff] }
 0x158   : > { %v959_v29 = vpop.permute.xlu1 %958 }
 0x159   : > { %969 = vst.msk [vmem:[#allocation3 + $0x20] sm:$0xff] %vm966_vm2, %v959_v29  ;;  %v1323_v29 = vld [vmem:[%s3603_s4 + $0x20] sm:$0xff] }
 0x15d   : > { %v482_v30 = vpop.permute.xlu1 %481 }
 0x15e   : > { %492 = vst.msk [vmem:[#allocation2 + $0x10] sm:$0xff] %vm489_vm3, %v482_v30  ;;  %v1310_v30 = vld [vmem:[%s3602_s3 + $0x10] sm:$0xf] }
 0x1a6   : > { %v2701_v31 = vpop.f32.mrf.mxu0 }
 0x1a7   : > { %v2631_v32 = vpop.f32.mrf.mxu1  ;;  %1192 = vrot.lane.b32.xlu0 %v2701_v31, %s2849_s18 }
 0x1a8   : > { %v580_v33 = vmul.f32 2.0, %v2631_v32  ;;  %v1167_v34 = vpop.f32.mrf.mxu0  ;;  %v1309_v32 = vld [vmem:[%s3602_s3 + $0x8] sm:$0xff] }
 0x1a9   : > { %v560_v35 = vpop.f32.mrf.mxu1  ;;  %1190 = vrot.lane.b32.xlu1 %v1167_v34, %s2849_s18 }
 0x1aa   : > { %v579_v36 = vmul.f32 2.0, %v560_v35  ;;  %v3108_v37 = vpop.f32.mrf.mxu0  ;;  %v584_v38 = vsub.f32 %v580_v33, %v2948_v6  ;;  %v1328_v6 = vld [vmem:[%s3603_s4 + $0x48] sm:$0xff]  ;;  %v1321_v33 = vld [vmem:[%s3603_s4 + $0x10] sm:$0xff]  ;;  %v1308_v35 = vld [vmem:[%s3602_s3] sm:$0xff] }
 0x1ab   : > { %v2634_v40 = vpop.f32.mrf.mxu1 }
 0x1ac   : > { %v583_v39 = vsub.f32 %v579_v36, %v2962_v8  ;;  %v1177_v42 = vpop.f32.mrf.mxu0  ;;  %v582_v44 = vmul.f32 2.0, %v2634_v40 }
 0x1ad   : > { %593 = vrot.lane.b32.xlu1 %v584_v38, %s2850_s19  ;;  %v570_v41 = vpop.f32.mrf.mxu1  ;;  %v1320_v38 = vld [vmem:[%s3603_s4 + $0x8] sm:$0xff] }
 0x1ae   : > { %591 = vrot.lane.b32.xlu0 %v583_v39, %s2850_s19  ;;  %v581_v43 = vmul.f32 2.0, %v570_v41  ;;  %v586_v48 = vsub.f32 %v582_v44, %v2932_v1  ;;  %v1329_v1 = vld [vmem:[%s3603_s4 + $0x50] sm:$0xff] }
 0x1af   : > { %1362 = vmatpush1.msra.mxu0 %v1329_v1 }
 0x1b0   : > { %v2645_v45 = vpop.f32.mrf.mxu1  ;;  %v585_v47 = vsub.f32 %v581_v43, %v2936_v3  ;;  %1363 = vmatprep.subr.mxu0 %v2852_v55 }
 0x1b1   : > { %1194 = vrot.lane.b32.xlu1 %v1177_v42, %s2849_s18  ;;  %1364 = vmatpush1.msra.mxu0 %v1328_v6 }
 0x1b2   : > { %v691_v46 = vpop.f32.mrf.mxu1  ;;  %716 = vrot.lane.b32.xlu0 %v2645_v45, %s2851_s20  ;;  %1365 = vmatprep.subr.mxu0 %v2852_v55 }
 0x1b3   : > { %1366 = vmatpush1.msra.mxu0 %v1327_v24 }
 0x1b4   : > { %v3116_v49 = vpop.f32.mrf.mxu1  ;;  %1367 = vmatprep.subr.mxu0 %v2852_v55 }
 0x1b5   : > { %2649 = vmatprep.subr.mxu1 %v3116_v49  ;;  %595 = vrot.lane.b32.xlu1 %v585_v47, %s2850_s19 }
 0x1b6   : > { %v701_v50 = vpop.f32.mrf.mxu1  ;;  %2650 = vmatpush3.msra.mxu1 %v3116_v49  ;;  %597 = vrot.lane.b32.xlu0 %v586_v48, %s2850_s19  ;;  %v1336_v48 = vld [vmem:[%s3603_s4 + $0x88] sm:$0xff]  ;;  %s2854_s19 = smov 64  }
 0x1b7   : > { %2651 = vmatprep.subr.mxu1 %v701_v50  ;;  %1368 = vmatpush1.msra.mxu0 %v1326_v26 }
 0x1b8   : > { %2652 = vmatpush3.msra.mxu1 %v701_v50  ;;  %1369 = vmatprep.subr.mxu0 %v2852_v55 }
 0x1b9   : > { %2653 = vmatprep.subr.mxu1 %v2645_v45  ;;  %718 = vrot.lane.b32.xlu1 %v701_v50, %s2851_s20 }
 0x1ba   : > { %2654 = vmatpush3.msra.mxu1 %v2645_v45  ;;  %714 = vrot.lane.b32.xlu0 %v691_v46, %s2851_s20 }
 0x1bb   : > { %2655 = vmatprep.subr.mxu1 %v691_v46  ;;  %1370 = vmatpush1.msra.mxu0 %v1325_v27 }
 0x1bc   : > { %2656 = vmatpush3.msra.mxu1 %v691_v46  ;;  %1371 = vmatprep.subr.mxu0 %v2852_v55  ;;  %v1337_v46 = vld [vmem:[%s3603_s4 + $0x90] sm:$0xff] }
 0x1bd   : > { %2658 = vmatmul.mubr.msk.f32.vlgmr.msra.gmra.mxu1 %vm375_vm0, %v3052_v21  ;;  %2677 = vmatprep.subr.mxu1 %v3026_v18 }
 0x1be   : > { %2678 = vmatpush3.msra.mxu1 %v3026_v18  ;;  %2660 = vmatprep.mubr.msk.f32.mxu1 %vm375_vm0, %v3064_v22 }
 0x1bf   : > { %2679 = vmatprep.subr.mxu1 %v3034_v20  ;;  %1372 = vmatpush1.msra.mxu0 %v1324_v28 }
 0x1c0   : > { %2680 = vmatpush3.msra.mxu1 %v3034_v20  ;;  %1373 = vmatprep.subr.mxu0 %v2852_v55 }
 0x1c1   : > { %2661 = vmatmul.mubr.msk.f32.gmra.mxu1 %vm375_vm0, %v3073_v23  ;;  %2681 = vmatprep.subr.mxu1 %v3014_v14 }
 0x1c2   : > { %2682 = vmatpush3.msra.mxu1 %v3014_v14  ;;  %2685 = vmatprep.mubr.msk.f32.mxu1 %vm375_vm0, %v2916_v0 }
 0x1c3   : > { %2683 = vmatprep.subr.mxu1 %v3020_v16  ;;  %1374 = vmatpush1.msra.mxu0 %v1323_v29 }
 0x1c4   : > { %2684 = vmatpush3.msra.mxu1 %v3020_v16  ;;  %1375 = vmatprep.subr.mxu0 %v2852_v55 }
 0x1c5   : > { %2686 = vmatmul.mubr.msk.f32.vlgmr.msra.gmra.mxu1 %vm375_vm0, %v2971_v9  ;;  %2705 = vmatprep.subr.mxu1 %v3108_v37 }
 0x1c6   : > { %2706 = vmatpush3.msra.mxu1 %v3108_v37  ;;  %2688 = vmatprep.mubr.msk.f32.mxu1 %vm375_vm0, %v2978_v10 }
 0x1c7   : > { %2707 = vmatprep.subr.mxu1 %v1177_v42 }
 0x1c8   : > { %2708 = vmatpush3.msra.mxu1 %v1177_v42  ;;  %v1319_v42 = vld [vmem:[%s3603_s4] sm:$0xff] }
 0x1c9   : > { %2689 = vmatmul.mubr.msk.f32.gmra.mxu1 %vm375_vm0, %v2993_v11  ;;  %2709 = vmatprep.subr.mxu1 %v2701_v31 }
 0x1ca   : > { %2710 = vmatpush3.msra.mxu1 %v2701_v31  ;;  %2713 = vmatprep.mubr.msk.f32.mxu1 %vm375_vm0, %v3004_v12  ;;  %v1322_v31 = vld [vmem:[%s3603_s4 + $0x18] sm:$0xff] }
 0x1cb   : > { %2711 = vmatprep.subr.mxu1 %v1167_v34  ;;  %1376 = vmatpush1.msra.mxu0 %v1322_v31 }
 0x1cc   : > { %2712 = vmatpush3.msra.mxu1 %v1167_v34  ;;  %1377 = vmatprep.subr.mxu0 %v2852_v55 }
 0x1cd   : > { %2714 = vmatmul.mubr.msk.f32.vlgmr.msra.gmra.mxu1 %vm375_vm0, %v3052_v21  ;;  %2719 = vmatprep.subr.msk.mxu1 %vm1449_vm6, %v1310_v30 }
 0x1ce   : > { %2716 = vmatprep.mubr.msk.f32.mxu1 %vm375_vm0, %v3064_v22  ;;  %2720 = vmatpush3.msk.msra.mxu1 %vm1449_vm6, %v1310_v30 }
 0x1cf   : > { %2721 = vmatprep.subr.mxu1 %v1309_v32  ;;  %1378 = vmatpush1.msra.mxu0 %v1321_v33 }
 0x1d0   : > { %2722 = vmatpush3.msra.mxu1 %v1309_v32  ;;  %1379 = vmatprep.subr.mxu0 %v2852_v55 }
 0x1d1   : > { %2717 = vmatmul.mubr.msk.f32.gmra.mxu1 %vm375_vm0, %v3073_v23  ;;  %2723 = vmatprep.subr.mxu1 %v1308_v35 }
 0x1d2   : > { %1380 = vmatpush1.msra.mxu0 %v1320_v38  ;;  %2724 = vmatpush3.msra.mxu1 %v1308_v35 }
 0x1d3   : > { %1381 = vmatprep.subr.mxu0 %v2852_v55 }
 0x1d4   : > { %1382 = vmatpush1.msra.mxu0 %v1319_v42 }
 0x1d5   : > { %1407 = vmatprep.subr.mxu0 %v2852_v55 }
 0x219   : > { %v3154_v51 = vpop.permute.xlu0 %1192 }
 0x21b   : > { %v3156_v52 = vpop.permute.xlu1 %1190 }
 0x21f   : > { %v594_v54 = vpop.permute.xlu1 %593 }
 0x220   : > { %605 = vst.msk [vmem:[#allocation2 + $0x8] sm:$0xff] %vm603_vm4, %v594_v54  ;;  %v592_v57 = vpop.permute.xlu0 %591 }
 0x221   : > { %604 = vst.msk [vmem:[#allocation2] sm:$0xff] %vm603_vm4, %v592_v57 }
 0x223   : > { %v3171_v59 = vpop.permute.xlu1 %1194 }
 0x224   : > { %v717_v61 = vpop.permute.xlu0 %716 }
 0x225   : > { %728 = vst.msk [vmem:[#allocation2 + $0x8] sm:$0xff] %vm726_vm5, %v717_v61 }
 0x227   : > { %v596_v63 = vpop.permute.xlu1 %595 }
 0x228   : > { %v598_v3 = vpop.permute.xlu0 %597  ;;  %606 = vst.msk [vmem:[#allocation2 + $0x10] sm:$0xff] %vm603_vm4, %v596_v63 }
 0x229   : > { %607 = vst.msk [vmem:[#allocation2 + $0x18] sm:$0xff] %vm603_vm4, %v598_v3 }
 0x22b   : > { %v719_v8 = vpop.permute.xlu1 %718 }
 0x22c   : > { %v715_v25 = vpop.permute.xlu0 %714  ;;  %729 = vst.msk [vmem:[#allocation2 + $0x10] sm:$0xff] %vm726_vm5, %v719_v8 }
 0x22d   : > { %727 = vst.msk [vmem:[#allocation2] sm:$0xff] %vm726_vm5, %v715_v25 }
 0x27d   : > { %v2659_v34 = vpop.f32.mrf.mxu1 }
 0x27e   : > { %v817_v36 = vmul.f32 2.0, %v2659_v34 }
 0x27f   : > { %v797_v39 = vpop.f32.mrf.mxu1 }
 0x280   : > { %v821_v40 = vsub.f32 %v817_v36, %v3012_v13  ;;  %v816_v41 = vmul.f32 2.0, %v797_v39  ;;  %v1338_v13 = vld [vmem:[%s3603_s4 + $0x98] sm:$0xff] }
 0x281   : > { %v2662_v43 = vpop.f32.mrf.mxu1  ;;  %1408 = vmatpush2.msra.mxu0 %v1338_v13 }
 0x282   : > { %v820_v44 = vsub.f32 %v816_v41, %v3018_v15  ;;  %830 = vrot.lane.b32.xlu0 %v821_v40, %s2853_s27  ;;  %1409 = vmatprep.subr.mxu0 %v2852_v55  ;;  %v819_v31 = vmul.f32 2.0, %v2662_v43 }
 0x283   : > { %v807_v45 = vpop.f32.mrf.mxu1  ;;  %1410 = vmatpush2.msra.mxu0 %v1337_v46 }
 0x284   : > { %828 = vrot.lane.b32.xlu1 %v820_v44, %s2853_s27  ;;  %1411 = vmatprep.subr.mxu0 %v2852_v55  ;;  %v818_v28 = vmul.f32 2.0, %v807_v45  ;;  %v823_v33 = vsub.f32 %v819_v31, %v3024_v17 }
 0x285   : > { %v2687_v15 = vpop.f32.mrf.mxu1  ;;  %1412 = vmatpush2.msra.mxu0 %v1336_v48 }
 0x286   : > { %v1057_v47 = vmul.f32 2.0, %v2687_v15  ;;  %1413 = vmatprep.subr.mxu0 %v2852_v55  ;;  %v822_v32 = vsub.f32 %v818_v28, %v3032_v19 }
 0x287   : > { %v1037_v50 = vpop.f32.mrf.mxu1  ;;  %1414 = vmatpush2.msra.mxu0 %v1335_v56 }
 0x288   : > { %v1061_v53 = vsub.f32 %v1057_v47, %v2942_v5  ;;  %v1056_v54 = vmul.f32 2.0, %v1037_v50  ;;  %720 = vrot.lane.b32.xlu1 %v3116_v49, %s2851_s20  ;;  %2076 = vmatprep.subr.mxu0 %v2852_v55  ;;  %s356_s20 = scalar_lea.vmem %s3608_s9, %s2922_s14 }
 0x289   : > { %v2690_v57 = vpop.f32.mrf.mxu1 }
 0x28a   : > { %v1059_v58 = vmul.f32 2.0, %v2690_v57  ;;  %1070 = vrot.lane.b32.xlu0 %v1061_v53, %s2854_s19  ;;  %v1060_v61 = vsub.f32 %v1056_v54, %v2950_v7  ;;  %v2460_v54 = vld [vmem:[%s3606_s7] ss:$0 sm:$0xff] }
 0x28b   : > { %v1047_v60 = vpop.f32.mrf.mxu1 }
 0x28c   : > { %v1063_v62 = vsub.f32 %v1059_v58, %v2934_v2  ;;  %v1058_v3 = vmul.f32 2.0, %v1047_v60 }
 0x28d   : > { %v2715_v49 = vpop.f32.mrf.mxu1 }
 0x28e   : > { %v1293_v63 = vmul.f32 2.0, %v2715_v49  ;;  %1068 = vrot.lane.b32.xlu0 %v1060_v61, %s2854_s19  ;;  %1074 = vrot.lane.b32.xlu1 %v1063_v62, %s2854_s19  ;;  %v1062_v29 = vsub.f32 %v1058_v3, %v2940_v4 }
 0x28f   : > { %v1273_v1 = vpop.f32.mrf.mxu1 }
 0x290   : > { %v1297_v6 = vsub.f32 %v1293_v63, %v3014_v14  ;;  %v1292_v8 = vmul.f32 2.0, %v1273_v1 }
 0x291   : > { %v2718_v24 = vpop.f32.mrf.mxu1 }
 0x292   : > { %1301 = vst.msk [vmem:[#allocation3 + $0x18] sm:$0xff] %vm375_vm0, %v1297_v6  ;;  %v1296_v25 = vsub.f32 %v1292_v8, %v3020_v16  ;;  %v1295_v26 = vmul.f32 2.0, %v2718_v24  ;;  %960 = vrot.lane.b32.xlu0 %v3026_v18, %s2847_s29  ;;  %1196 = vrot.lane.b32.xlu1 %v3108_v37, %s2849_s18 }
 0x293   : > { %v1283_v27 = vpop.f32.mrf.mxu1 }
 0x294   : > { %1300 = vst.msk [vmem:[#allocation3 + $0x8] sm:$0xff] %vm375_vm0, %v1296_v25  ;;  %v1299_v14 = vsub.f32 %v1295_v26, %v3026_v18  ;;  %v1294_v30 = vmul.f32 2.0, %v1283_v27 }
 0x296   : > { %1303 = vst.msk [vmem:[#allocation3 + $0x38] sm:$0xff] %vm375_vm0, %v1299_v14  ;;  %v1298_v16 = vsub.f32 %v1294_v30, %v3034_v20  ;;  %1072 = vrot.lane.b32.xlu0 %v1062_v29, %s2854_s19 }
 0x298   : > { %1302 = vst.msk [vmem:[#allocation3 + $0x28] sm:$0xff] %vm375_vm0, %v1298_v16 }
 0x299   : > { %v1314_v42 = vld [vmem:[#allocation3 + $0x18] sm:$0xff] }
 0x29a   : > { %832 = vrot.lane.b32.xlu0 %v822_v32, %s2853_s27 }
 0x29b   : > { %v1312_v37 = vld [vmem:[#allocation3 + $0x8] sm:$0xff] }
 0x29c   : > { %2451 = vmatprep.mubr.msk.f32.mxu0 %vm375_vm0, %v1312_v37 }
 0x29d   : > { %v1318_v46 = vld [vmem:[#allocation3 + $0x38] sm:$0xff] }
 0x29e   : > { %834 = vrot.lane.b32.xlu0 %v823_v33, %s2853_s27 }
 0x29f   : > { %v1316_v44 = vld [vmem:[#allocation3 + $0x28] sm:$0xff] }
 0x2f4   : > { %v831_v18 = vpop.permute.xlu0 %830 }
 0x2f5   : > { %842 = vst.msk [vmem:[#allocation2 + $0x8] sm:$0xff] %vm840_vm7, %v831_v18 }
 0x2f6   : > { %v829_v20 = vpop.permute.xlu1 %828 }
 0x2f7   : > { %841 = vst.msk [vmem:[#allocation2] sm:$0xff] %vm840_vm7, %v829_v20 }
 0x2fa   : > { %v721_v34 = vpop.permute.xlu1 %720 }
 0x2fb   : > { %730 = vst.msk [vmem:[#allocation2 + $0x18] sm:$0xff] %vm726_vm5, %v721_v34 }
 0x2fc   : > { %v1071_v19 = vpop.permute.xlu0 %1070  ;;  %v3300_v35 = vld [vmem:[#allocation2 + $0x8] sm:$0xff] }
 0x2fd   : > { %1082 = vst.msk [vmem:[#allocation3 + $0x10] sm:$0xff] %vm1080_vm8, %v1071_v19 }
 0x2fe   : > { %1204 = vst.msk [vmem:[#allocation3 + $0x10] sm:$0xff] %vm1202_vm9, %v3154_v51  ;;  %v3296_v17 = vld [vmem:[#allocation2] sm:$0xff] }
 0x2ff   : > { %2725 = vmatprep.mubr.msk.f32.mxu1 %vm1436_vm10, %v3296_v17 }
 0x300   : > { %v1069_v36 = vpop.permute.xlu0 %1068  ;;  %v1075_v38 = vpop.permute.xlu1 %1074  ;;  %2726 = vmatmul.mubr.msk.f32.vlgmr.msra.gmra.mxu1 %vm1436_vm10, %v3300_v35 }
 0x301   : > { %1081 = vst.msk [vmem:[#allocation3] sm:$0xff] %vm1080_vm8, %v1069_v36 }
 0x302   : > { %1203 = vst.msk [vmem:[#allocation3] sm:$0xff] %vm1202_vm9, %v3156_v52 }
 0x304   : > { %v961_v39 = vpop.permute.xlu0 %960  ;;  %v1197_v51 = vpop.permute.xlu1 %1196 }
 0x305   : > { %970 = vst.msk [vmem:[#allocation3 + $0x30] sm:$0xff] %vm966_vm2, %v961_v39  ;;  %v1313_v43 = vld [vmem:[#allocation3 + $0x10] sm:$0xff] }
 0x306   : > { %1084 = vst.msk [vmem:[#allocation3 + $0x30] sm:$0xff] %vm1080_vm8, %v1075_v38 }
 0x307   : > { %1206 = vst.msk [vmem:[#allocation3 + $0x30] sm:$0xff] %vm1202_vm9, %v1197_v51 }
 0x308   : > { %v1073_v40 = vpop.permute.xlu0 %1072 }
 0x309   : > { %1083 = vst.msk [vmem:[#allocation3 + $0x20] sm:$0xff] %vm1080_vm8, %v1073_v40  ;;  %v1311_v41 = vld [vmem:[#allocation3] sm:$0xff] }
 0x30a   : > { %1205 = vst.msk [vmem:[#allocation3 + $0x20] sm:$0xff] %vm1202_vm9, %v3171_v59  ;;  %1416 = vmatmul.mubr.f32.vlgmr.msra.gmra.mxu0 %v1311_v41 }
 0x30b   : > { %2452 = vmatprep.mubr.msk.f32.mxu0 %vm375_vm0, %v1314_v42 }
 0x30c   : > { %v833_v52 = vpop.permute.xlu0 %832 }
 0x30d   : > { %843 = vst.msk [vmem:[#allocation2 + $0x10] sm:$0xff] %vm840_vm7, %v833_v52 }
 0x30e   : > { %1421 = vmatmul.mubr.f32.gmra.mxu0 %v1313_v43  ;;  %v1317_v15 = vld [vmem:[#allocation3 + $0x30] sm:$0xff] }
 0x30f   : > { %2453 = vmatprep.mubr.msk.f32.mxu0 %vm375_vm0, %v1316_v44 }
 0x310   : > { %v835_v13 = vpop.permute.xlu0 %834 }
 0x311   : > { %844 = vst.msk [vmem:[#allocation2 + $0x18] sm:$0xff] %vm840_vm7, %v835_v13  ;;  %v1315_v45 = vld [vmem:[#allocation3 + $0x20] sm:$0xff] }
 0x312   : > { %1426 = vmatmul.mubr.f32.gmra.mxu0 %v1315_v45 }
 0x313   : > { %2454 = vmatprep.mubr.msk.f32.mxu0 %vm375_vm0, %v1318_v46 }
 0x314   : > { %v3318_v59 = vld [vmem:[#allocation2 + $0x10] sm:$0xff] }
 0x315   : > { %2728 = vmatprep.mubr.msk.f32.mxu1 %vm1436_vm10, %v3318_v59 }
 0x316   : > { %1431 = vmatmul.mubr.f32.gmra.mxu0 %v1317_v15 }
 0x318   : > { %v3322_v47 = vld [vmem:[#allocation2 + $0x18] sm:$0xff] }
 0x319   : > { %2729 = vmatmul.mubr.msk.f32.gmra.mxu1 %vm1436_vm10, %v3322_v47 }
 0x31a   : > { %2739 = vmatprep.mubr.msk.f32.mxu1 %vm375_vm0, %v2916_v0 }
 0x3c0   : > { %v2727_v48 = vpop.f32.mrf.mxu1 }
 0x3c2   : > { %v1519_v50 = vpop.f32.mrf.mxu1 }
 0x3ca   : > { %v1417_v53 = vpop.f32.mrf.mxu0 }
 0x3cb   : > { %v1520_v56 = vadd.f32 %v1519_v50, %v1417_v53 }
 0x3cc   : > { %v1419_v57 = vpop.f32.mrf.mxu0 }
 0x3cd   : > { %v1545_v58 = vadd.f32 %v2460_v54, %v1520_v56 }
 0x3ce   : > { %v1422_v60 = vpop.f32.mrf.mxu0 }
 0x3cf   : > { %v2461_v61 = vmul.f32 -1.442695, %v1545_v58  ;;  %v1525_v62 = vadd.f32 %v2727_v48, %v1422_v60 }
 0x3d0   : > { %v1424_v49 = vpop.f32.mrf.mxu0 }
 0x3d1   : > { %2815 = vpow2.f32 %v2461_v61  ;;  %v1546_v63 = vadd.f32 %v2460_v54, %v1525_v62  ;;  %v2035_v49 = vld [vmem:[%s3604_s5 + $0x10] sm:$0xf] }
 0x3d2   : > { %v1427_v1 = vpop.f32.mrf.mxu0 }
 0x3d3   : > { %v2462_v3 = vmul.f32 -1.442695, %v1546_v63  ;;  %v2034_v63 = vld [vmem:[%s3604_s5 + $0x8] sm:$0xff] }
 0x3d4   : > { %v1429_v6 = vpop.f32.mrf.mxu0 }
 0x3d5   : > { %2817 = vpow2.f32 %v2462_v3  ;;  %v2033_v3 = vld [vmem:[%s3604_s5] sm:$0xff] }
 0x3d6   : > { %v1432_v8 = vpop.f32.mrf.mxu0  ;;  %v2048_v6 = vld [vmem:[%s3605_s6 + $0x20] sm:$0xff] }
 0x3d8   : > { %v1434_v24 = vpop.f32.mrf.mxu0 }
 0x3d9   : > { %v2730_v25 = vpop.f32.mrf.mxu1  ;;  %v2046_v24 = vld [vmem:[%s3605_s6 + $0x10] sm:$0xff] }
 0x3da   : > { %v1535_v26 = vadd.f32 %v2730_v25, %v1432_v8  ;;  %v2047_v8 = vld [vmem:[%s3605_s6 + $0x18] sm:$0xff]  ;;  %v2045_v25 = vld [vmem:[%s3605_s6 + $0x8] sm:$0xff] }
 0x3db   : > { %v1529_v27 = vpop.f32.mrf.mxu1 }
 0x3dc   : > { %v1548_v28 = vadd.f32 %v2460_v54, %v1535_v26  ;;  %v1530_v29 = vadd.f32 %v1529_v27, %v1427_v1  ;;  %v2044_v26 = vld [vmem:[%s3605_s6] sm:$0xff]  ;;  %v2063_v27 = vld [vmem:[%s3605_s6 + $0x98] sm:$0xff] }
 0x3de   : > { %v2816_v14 = vpop.eup %2815  ;;  %v2464_v30 = vmul.f32 -1.442695, %v1548_v28  ;;  %v1547_v16 = vadd.f32 %v2460_v54, %v1530_v29  ;;  %v2062_v28 = vld [vmem:[%s3605_s6 + $0x90] sm:$0xff]  ;;  %v2061_v29 = vld [vmem:[%s3605_s6 + $0x88] sm:$0xff] }
 0x3df   : > { %v1561_v31 = vadd.f32 1.0, %v2816_v14  ;;  %v2060_v14 = vld [vmem:[%s3605_s6 + $0x80] sm:$0xff] }
 0x3e0   : > { %2819 = vpow2.f32 %v2464_v30  ;;  %v2463_v32 = vmul.f32 -1.442695, %v1547_v16 }
 0x3e1   : > { %2821 = vrcp.f32 %v1561_v31 }
 0x3e2   : > { %v2818_v37 = vpop.eup %2817  ;;  %2823 = vpow2.f32 %v2463_v32 }
 0x3e3   : > { %v1562_v33 = vadd.f32 1.0, %v2818_v37 }
 0x3e5   : > { %2825 = vrcp.f32 %v1562_v33 }
 0x3ed   : > { %v2820_v18 = vpop.eup %2819 }
 0x3ee   : > { %v3331_v20 = vpop.eup %2821  ;;  %v1564_v34 = vadd.f32 1.0, %v2820_v18 }
 0x3ef   : > { %v2824_v19 = vpop.eup %2823  ;;  %v3335_v36 = vmul.f32 %v3331_v20, %v2950_v7 }
 0x3f0   : > { %2827 = vrcp.f32 %v1564_v34  ;;  %v1563_v38 = vadd.f32 1.0, %v2824_v19 }
 0x3f1   : > { %1577 = vst.msk [vmem:[#allocation4] sm:$0xff] %vm375_vm0, %v3335_v36 }
 0x3f2   : > { %v3339_v39 = vpop.eup %2825  ;;  %2829 = vrcp.f32 %v1563_v38 }
 0x3f3   : > { %v1574_v51 = vmul.f32 %v3339_v39, %v2942_v5 }
 0x3f5   : > { %1578 = vst.msk [vmem:[#allocation4 + $0x10] sm:$0xff] %vm375_vm0, %v1574_v51 }
 0x3fd   : > { %v3344_v40 = vpop.eup %2827 }
 0x3fe   : > { %v3348_v41 = vmul.f32 %v3344_v40, %v2934_v2 }
 0x3ff   : > { %v3350_v42 = vpop.eup %2829 }
 0x400   : > { %2731 = vmatprep.subr.mxu1 %v3348_v41  ;;  %1580 = vst.msk [vmem:[#allocation4 + $0x30] sm:$0xff] %vm375_vm0, %v3348_v41  ;;  %v3357_v52 = vmul.f32 %v3350_v42, %v2940_v4 }
 0x401   : > { %2732 = vmatpush3.msra.mxu1 %v3348_v41 }
 0x402   : > { %2733 = vmatprep.subr.mxu1 %v3357_v52  ;;  %1579 = vst.msk [vmem:[#allocation4 + $0x20] sm:$0xff] %vm375_vm0, %v3357_v52 }
 0x403   : > { %2734 = vmatpush3.msra.mxu1 %v3357_v52 }
 0x404   : > { %2735 = vmatprep.subr.mxu1 %v1574_v51 }
 0x405   : > { %2736 = vmatpush3.msra.mxu1 %v1574_v51 }
 0x406   : > { %2737 = vmatprep.subr.mxu1 %v3335_v36 }
 0x407   : > { %2738 = vmatpush3.msra.mxu1 %v3335_v36 }
 0x408   : > { %2740 = vmatmul.mubr.msk.f32.vlgmr.msra.gmra.mxu1 %vm375_vm0, %v2971_v9 }
 0x409   : > { %2742 = vmatprep.mubr.msk.f32.mxu1 %vm375_vm0, %v2978_v10 }
 0x40c   : > { %2743 = vmatmul.mubr.msk.f32.gmra.mxu1 %vm375_vm0, %v2993_v11 }
 0x40d   : > { %2753 = vmatprep.mubr.msk.f32.mxu1 %vm375_vm0, %v2916_v0 }
 0x4c8   : > { %v3374_v43 = vpop.f32.mrf.mxu1 }
 0x4c9   : > { %1688 = vrot.lane.b32.xlu1 %v3374_v43, %s2847_s29 }
 0x4ca   : > { %v3378_v44 = vpop.f32.mrf.mxu1 }
 0x4cb   : > { %1686 = vrot.lane.b32.xlu0 %v3378_v44, %s2847_s29 }
 0x4cc   : > { %v3382_v13 = vpop.f32.mrf.mxu1 }
 0x4cd   : > { %2745 = vmatprep.subr.mxu1 %v3382_v13 }
 0x4ce   : > { %v3385_v45 = vpop.f32.mrf.mxu1  ;;  %2746 = vmatpush3.msra.mxu1 %v3382_v13 }
 0x4cf   : > { %2747 = vmatprep.subr.mxu1 %v3385_v45 }
 0x4d0   : > { %2748 = vmatpush3.msra.mxu1 %v3385_v45 }
 0x4d1   : > { %2749 = vmatprep.subr.mxu1 %v3374_v43 }
 0x4d2   : > { %2750 = vmatpush3.msra.mxu1 %v3374_v43 }
 0x4d3   : > { %2751 = vmatprep.subr.mxu1 %v3378_v44 }
 0x4d4   : > { %2752 = vmatpush3.msra.mxu1 %v3378_v44 }
 0x4d5   : > { %2754 = vmatmul.mubr.msk.f32.vlgmr.msra.gmra.mxu1 %vm375_vm0, %v2971_v9  ;;  %2759 = vmatprep.subr.mxu1 %v3382_v13 }
 0x4d6   : > { %2760 = vmatpush3.msra.mxu1 %v3382_v13  ;;  %2756 = vmatprep.mubr.msk.f32.mxu1 %vm375_vm0, %v2978_v10 }
 0x4d7   : > { %2761 = vmatprep.subr.mxu1 %v3385_v45 }
 0x4d8   : > { %2762 = vmatpush3.msra.mxu1 %v3385_v45 }
 0x4d9   : > { %2757 = vmatmul.mubr.msk.f32.gmra.mxu1 %vm375_vm0, %v2993_v11  ;;  %2763 = vmatprep.subr.mxu1 %v3374_v43 }
 0x4da   : > { %2764 = vmatpush3.msra.mxu1 %v3374_v43  ;;  %2767 = vmatprep.mubr.msk.f32.mxu1 %vm375_vm0, %v3004_v12 }
 0x4db   : > { %2765 = vmatprep.subr.mxu1 %v3378_v44 }
 0x4dc   : > { %2766 = vmatpush3.msra.mxu1 %v3378_v44 }
 0x4dd   : > { %2768 = vmatmul.mubr.msk.f32.vlgmr.msra.gmra.mxu1 %vm375_vm0, %v3052_v21 }
 0x4de   : > { %2770 = vmatprep.mubr.msk.f32.mxu1 %vm375_vm0, %v3064_v22 }
 0x4e1   : > { %2771 = vmatmul.mubr.msk.f32.gmra.mxu1 %vm375_vm0, %v3073_v23 }
 0x4e2   : > { %2781 = vmatprep.mubr.msk.f32.mxu1 %vm375_vm0, %v3004_v12 }
 0x53b   : > { %v1689_v0 = vpop.permute.xlu1 %1688 }
 0x53c   : > { %1699 = vst.msk [vmem:[#allocation4 + $0x10] sm:$0xff] %vm966_vm2, %v1689_v0 }
 0x53d   : > { %v1687_v9 = vpop.permute.xlu0 %1686 }
 0x53e   : > { %1698 = vst.msk [vmem:[#allocation4] sm:$0xff] %vm966_vm2, %v1687_v9 }
 0x595   : > { %v2755_v10 = vpop.f32.mrf.mxu1 }
 0x596   : > { %v1788_v11 = vmul.f32 2.0, %v2755_v10 }
 0x597   : > { %v1768_v46 = vpop.f32.mrf.mxu1 }
 0x598   : > { %v1792_v15 = vsub.f32 %v1788_v11, %v1574_v51  ;;  %v1787_v48 = vmul.f32 2.0, %v1768_v46 }
 0x599   : > { %v2758_v50 = vpop.f32.mrf.mxu1 }
 0x59a   : > { %v1791_v53 = vsub.f32 %v1787_v48, %v3335_v36  ;;  %1801 = vrot.lane.b32.xlu0 %v1792_v15, %s2854_s19  ;;  %v1790_v62 = vmul.f32 2.0, %v2758_v50 }
 0x59b   : > { %v1778_v54 = vpop.f32.mrf.mxu1 }
 0x59c   : > { %1799 = vrot.lane.b32.xlu1 %v1791_v53, %s2854_s19  ;;  %v1789_v56 = vmul.f32 2.0, %v1778_v54  ;;  %v1794_v1 = vsub.f32 %v1790_v62, %v3348_v41 }
 0x59d   : > { %v2769_v12 = vpop.f32.mrf.mxu1 }
 0x59e   : > { %v1793_v60 = vsub.f32 %v1789_v56, %v3357_v52 }
 0x59f   : > { %v1897_v57 = vpop.f32.mrf.mxu1 }
 0x5a0   : > { %1922 = vrot.lane.b32.xlu1 %v2769_v12, %s2849_s18  ;;  %1920 = vrot.lane.b32.xlu0 %v1897_v57, %s2849_s18 }
 0x5a1   : > { %v2772_v58 = vpop.f32.mrf.mxu1 }
 0x5a2   : > { %2773 = vmatprep.subr.mxu1 %v2772_v58 }
 0x5a3   : > { %v1907_v61 = vpop.f32.mrf.mxu1  ;;  %2774 = vmatpush3.msra.mxu1 %v2772_v58 }
 0x5a4   : > { %1690 = vrot.lane.b32.xlu0 %v3385_v45, %s2847_s29  ;;  %2775 = vmatprep.subr.mxu1 %v1907_v61 }
 0x5a5   : > { %1803 = vrot.lane.b32.xlu1 %v1793_v60, %s2854_s19  ;;  %2776 = vmatpush3.msra.mxu1 %v1907_v61  ;;  %v2494_v60 = vld [vmem:[%s3607_s8] ss:$0 sm:$0xff] }
 0x5a6   : > { %2777 = vmatprep.subr.mxu1 %v2769_v12 }
 0x5a7   : > { %2778 = vmatpush3.msra.mxu1 %v2769_v12 }
 0x5a8   : > { %1924 = vrot.lane.b32.xlu0 %v1907_v61, %s2849_s18  ;;  %2779 = vmatprep.subr.mxu1 %v1897_v57 }
 0x5a9   : > { %1692 = vrot.lane.b32.xlu1 %v3382_v13, %s2847_s29  ;;  %2780 = vmatpush3.msra.mxu1 %v1897_v57 }
 0x5aa   : > { %2782 = vmatmul.mubr.msk.f32.vlgmr.msra.gmra.mxu1 %vm375_vm0, %v3052_v21  ;;  %2787 = vmatprep.subr.msk.mxu1 %vm1449_vm6, %v2035_v49  ;;  %v2059_v21 = vld [vmem:[%s3605_s6 + $0x78] sm:$0xff] }
 0x5ab   : > { %2784 = vmatprep.mubr.msk.f32.mxu1 %vm375_vm0, %v3064_v22  ;;  %2788 = vmatpush3.msk.msra.mxu1 %vm1449_vm6, %v2035_v49  ;;  %v2058_v22 = vld [vmem:[%s3605_s6 + $0x70] sm:$0xff] }
 0x5ac   : > { %1805 = vrot.lane.b32.xlu0 %v1794_v1, %s2854_s19  ;;  %2789 = vmatprep.subr.mxu1 %v2034_v63 }
 0x5ad   : > { %1926 = vrot.lane.b32.xlu1 %v2772_v58, %s2849_s18  ;;  %2790 = vmatpush3.msra.mxu1 %v2034_v63 }
 0x5ae   : > { %2785 = vmatmul.mubr.msk.f32.gmra.mxu1 %vm375_vm0, %v3073_v23  ;;  %2791 = vmatprep.subr.mxu1 %v2033_v3  ;;  %v2057_v23 = vld [vmem:[%s3605_s6 + $0x68] sm:$0xff] }
 0x5af   : > { %2793 = vmatprep.mubr.msk.f32.mxu1 %vm1436_vm10, %v3296_v17  ;;  %2792 = vmatpush3.msra.mxu1 %v2033_v3  ;;  %v2055_v17 = vld [vmem:[%s3605_s6 + $0x58] sm:$0xff] }
 0x5b0   : > { %2268 = vrot.lane.b32.xlu0 %v2950_v7, %s2847_s29  ;;  %2077 = vmatpush1.msra.mxu0 %v2059_v21  ;;  %v2056_v7 = vld [vmem:[%s3605_s6 + $0x60] sm:$0xff] }
 0x5b1   : > { %2078 = vmatprep.subr.mxu0 %v2852_v55 }
 0x5b2   : > { %2794 = vmatmul.mubr.msk.f32.vlgmr.msra.gmra.mxu1 %vm1436_vm10, %v3300_v35  ;;  %2079 = vmatpush1.msra.mxu0 %v2058_v22  ;;  %v2054_v35 = vld [vmem:[%s3605_s6 + $0x50] sm:$0xff] }
 0x5b3   : > { %2796 = vmatprep.mubr.msk.f32.mxu1 %vm1436_vm10, %v3318_v59  ;;  %2080 = vmatprep.subr.mxu0 %v2852_v55  ;;  %v2052_v59 = vld [vmem:[%s3605_s6 + $0x40] sm:$0xff] }
 0x5b4   : > { %2270 = vrot.lane.b32.xlu0 %v2942_v5, %s2847_s29  ;;  %2081 = vmatpush1.msra.mxu0 %v2057_v23  ;;  %v2053_v5 = vld [vmem:[%s3605_s6 + $0x48] sm:$0xff] }
 0x5b5   : > { %2082 = vmatprep.subr.mxu0 %v2852_v55 }
 0x5b6   : > { %2797 = vmatmul.mubr.msk.f32.gmra.mxu1 %vm1436_vm10, %v3322_v47  ;;  %2083 = vmatpush1.msra.mxu0 %v2056_v7  ;;  %v2050_v47 = vld [vmem:[%s3605_s6 + $0x30] sm:$0xff] }
 0x5b7   : > { %2084 = vmatprep.subr.mxu0 %v2852_v55 }
 0x5b8   : > { %2272 = vrot.lane.b32.xlu0 %v2940_v4, %s2847_s29  ;;  %2085 = vmatpush1.msra.mxu0 %v2055_v17  ;;  %v2051_v4 = vld [vmem:[%s3605_s6 + $0x38] sm:$0xff] }
 0x5b9   : > { %2086 = vmatprep.subr.mxu0 %v2852_v55 }
 0x5ba   : > { %2087 = vmatpush1.msra.mxu0 %v2054_v35 }
 0x5bb   : > { %2088 = vmatprep.subr.mxu0 %v2852_v55 }
 0x5bc   : > { %2274 = vrot.lane.b32.xlu0 %v2934_v2, %s2847_s29  ;;  %2089 = vmatpush1.msra.mxu0 %v2053_v5  ;;  %v2049_v2 = vld [vmem:[%s3605_s6 + $0x28] sm:$0xff] }
 0x5bd   : > { %2090 = vmatprep.subr.mxu0 %v2852_v55 }
 0x5be   : > { %2091 = vmatpush1.msra.mxu0 %v2052_v59 }
 0x5bf   : > { %2092 = vmatprep.subr.mxu0 %v2852_v55 }
 0x5c0   : > { %2093 = vmatpush1.msra.mxu0 %v2051_v4 }
 0x5c1   : > { %2094 = vmatprep.subr.mxu0 %v2852_v55 }
 0x5c2   : > { %2095 = vmatpush1.msra.mxu0 %v2050_v47 }
 0x5c3   : > { %2096 = vmatprep.subr.mxu0 %v2852_v55 }
 0x5c4   : > { %2097 = vmatpush1.msra.mxu0 %v2049_v2 }
 0x5c5   : > { %2098 = vmatprep.subr.mxu0 %v2852_v55 }
 0x5c6   : > { %2099 = vmatpush1.msra.mxu0 %v2048_v6 }
 0x5c7   : > { %2100 = vmatprep.subr.mxu0 %v2852_v55 }
 0x5c8   : > { %2101 = vmatpush1.msra.mxu0 %v2047_v8 }
 0x5c9   : > { %2102 = vmatprep.subr.mxu0 %v2852_v55 }
 0x5ca   : > { %2103 = vmatpush1.msra.mxu0 %v2046_v24 }
 0x5cb   : > { %2104 = vmatprep.subr.mxu0 %v2852_v55 }
 0x5cc   : > { %2105 = vmatpush1.msra.mxu0 %v2045_v25 }
 0x5cd   : > { %2106 = vmatprep.subr.mxu0 %v2852_v55 }
 0x5ce   : > { %2107 = vmatpush1.msra.mxu0 %v2044_v26 }
 0x5cf   : > { %2132 = vmatprep.subr.mxu0 %v2852_v55 }
 0x5d0   : > { %2133 = vmatpush2.msra.mxu0 %v2063_v27 }
 0x5d1   : > { %2134 = vmatprep.subr.mxu0 %v2852_v55 }
 0x5d2   : > { %2135 = vmatpush2.msra.mxu0 %v2062_v28  ;;  %v2284_v28 = vsub.f32 1.0, %v3331_v20 }
 0x5d3   : > { %2136 = vmatprep.subr.mxu0 %v2852_v55 }
 0x5d4   : > { %2137 = vmatpush2.msra.mxu0 %v2061_v29 }
 0x5d5   : > { %2138 = vmatprep.subr.mxu0 %v2852_v55 }
 0x5d6   : > { %2139 = vmatpush2.msra.mxu0 %v2060_v14 }
 0x60c   : > { %v1802_v30 = vpop.permute.xlu0 %1801 }
 0x60d   : > { %1812 = vst.msk [vmem:[#allocation4 + $0x10] sm:$0xff] %vm1080_vm8, %v1802_v30 }
 0x60e   : > { %v1800_v16 = vpop.permute.xlu1 %1799 }
 0x60f   : > { %1811 = vst.msk [vmem:[#allocation4] sm:$0xff] %vm1080_vm8, %v1800_v16 }
 0x612   : > { %v1923_v31 = vpop.permute.xlu1 %1922  ;;  %v1921_v32 = vpop.permute.xlu0 %1920 }
 0x613   : > { %1933 = vst.msk [vmem:[#allocation4 + $0x10] sm:$0xff] %vm1202_vm9, %v1923_v31  ;;  %1932 = vst.msk [vmem:[#allocation4] sm:$0xff] %vm1202_vm9, %v1921_v32  ;;  %v2285_v31 = vsub.f32 1.0, %v3339_v39 }
 0x616   : > { %v1691_v37 = vpop.permute.xlu0 %1690 }
 0x617   : > { %1700 = vst.msk [vmem:[#allocation4 + $0x20] sm:$0xff] %vm966_vm2, %v1691_v37  ;;  %v1804_v33 = vpop.permute.xlu1 %1803 }
 0x618   : > { %1813 = vst.msk [vmem:[#allocation4 + $0x20] sm:$0xff] %vm1080_vm8, %v1804_v33 }
 0x61a   : > { %v1925_v55 = vpop.permute.xlu0 %1924  ;;  %v2036_v50 = vld [vmem:[#allocation4] sm:$0xff] }
 0x61b   : > { %1934 = vst.msk [vmem:[#allocation4 + $0x20] sm:$0xff] %vm1202_vm9, %v1925_v55  ;;  %v1693_v18 = vpop.permute.xlu1 %1692 }
 0x61c   : > { %1701 = vst.msk [vmem:[#allocation4 + $0x30] sm:$0xff] %vm966_vm2, %v1693_v18 }
 0x61e   : > { %v1806_v34 = vpop.permute.xlu0 %1805 }
 0x61f   : > { %1814 = vst.msk [vmem:[#allocation4 + $0x30] sm:$0xff] %vm1080_vm8, %v1806_v34  ;;  %v1927_v19 = vpop.permute.xlu1 %1926  ;;  %v2286_v34 = vsub.f32 1.0, %v3350_v42 }
 0x620   : > { %1935 = vst.msk [vmem:[#allocation4 + $0x30] sm:$0xff] %vm1202_vm9, %v1927_v19 }
 0x622   : > { %v2269_v26 = vpop.permute.xlu0 %2268 }
 0x623   : > { %v2280_v14 = vmul.f32 %v3331_v20, %v2269_v26 }
 0x626   : > { %v2271_v27 = vpop.permute.xlu0 %2270 }
 0x627   : > { %v2281_v33 = vmul.f32 %v3339_v39, %v2271_v27 }
 0x62a   : > { %v2273_v32 = vpop.permute.xlu0 %2272 }
 0x62e   : > { %v2275_v20 = vpop.permute.xlu0 %2274 }
 0x62f   : > { %v2283_v39 = vmul.f32 %v3344_v40, %v2275_v20 }
 0x66a   : > { %v2783_v36 = vpop.f32.mrf.mxu1 }
 0x66b   : > { %v2022_v38 = vmul.f32 2.0, %v2783_v36  ;;  %v2282_v36 = vmul.f32 %v3350_v42, %v2273_v32 }
 0x66c   : > { %v2002_v51 = vpop.f32.mrf.mxu1 }
 0x66d   : > { %v2026_v41 = vsub.f32 %v2022_v38, %v3374_v43  ;;  %v2021_v52 = vmul.f32 2.0, %v2002_v51 }
 0x66e   : > { %v2786_v0 = vpop.f32.mrf.mxu1 }
 0x66f   : > { %2030 = vst.msk [vmem:[#allocation4 + $0x18] sm:$0xff] %vm375_vm0, %v2026_v41  ;;  %v2025_v9 = vsub.f32 %v2021_v52, %v3378_v44  ;;  %v2024_v10 = vmul.f32 2.0, %v2786_v0  ;;  %v2038_v44 = vld [vmem:[#allocation4 + $0x10] sm:$0xff]  ;;  %v2287_v41 = vsub.f32 1.0, %v3344_v40 }
 0x670   : > { %v2012_v11 = vpop.f32.mrf.mxu1 }
 0x671   : > { %2029 = vst.msk [vmem:[#allocation4 + $0x8] sm:$0xff] %vm375_vm0, %v2025_v9  ;;  %v2028_v46 = vsub.f32 %v2024_v10, %v3382_v13  ;;  %v2023_v15 = vmul.f32 2.0, %v2012_v11  ;;  %v2040_v13 = vld [vmem:[#allocation4 + $0x20] sm:$0xff] }
 0x672   : > { %v2795_v56 = vpop.f32.mrf.mxu1 }
 0x673   : > { %2032 = vst.msk [vmem:[#allocation4 + $0x38] sm:$0xff] %vm375_vm0, %v2028_v46  ;;  %v2027_v48 = vsub.f32 %v2023_v15, %v3385_v45  ;;  %v2042_v45 = vld [vmem:[#allocation4 + $0x30] sm:$0xff] }
 0x674   : > { %v2230_v57 = vpop.f32.mrf.mxu1 }
 0x675   : > { %2031 = vst.msk [vmem:[#allocation4 + $0x28] sm:$0xff] %vm375_vm0, %v2027_v48 }
 0x676   : > { %v2039_v53 = vld [vmem:[#allocation4 + $0x18] sm:$0xff]  ;;  %v2798_v63 = vpop.f32.mrf.mxu1 }
 0x678   : > { %v2037_v43 = vld [vmem:[#allocation4 + $0x8] sm:$0xff]  ;;  %v2240_v23 = vpop.f32.mrf.mxu1 }
 0x679   : > { %2485 = vmatprep.mubr.msk.f32.mxu0 %vm375_vm0, %v2037_v43 }
 0x67a   : > { %2141 = vmatmul.mubr.f32.vlgmr.msra.gmra.mxu0 %v2036_v50  ;;  %v2043_v12 = vld [vmem:[#allocation4 + $0x38] sm:$0xff] }
 0x67b   : > { %2486 = vmatprep.mubr.msk.f32.mxu0 %vm375_vm0, %v2039_v53 }
 0x67c   : > { %v2041_v54 = vld [vmem:[#allocation4 + $0x28] sm:$0xff] }
 0x67e   : > { %2146 = vmatmul.mubr.f32.gmra.mxu0 %v2038_v44 }
 0x67f   : > { %2487 = vmatprep.mubr.msk.f32.mxu0 %vm375_vm0, %v2041_v54 }
 0x682   : > { %2151 = vmatmul.mubr.f32.gmra.mxu0 %v2040_v13 }
 0x683   : > { %2488 = vmatprep.mubr.msk.f32.mxu0 %vm375_vm0, %v2043_v12 }
 0x686   : > { %2156 = vmatmul.mubr.f32.gmra.mxu0 %v2042_v45 }
 0x73a   : > { %v2142_v58 = vpop.f32.mrf.mxu0 }
 0x73b   : > { %v2231_v61 = vadd.f32 %v2230_v57, %v2142_v58 }
 0x73c   : > { %v2144_v62 = vpop.f32.mrf.mxu0 }
 0x73d   : > { %v2256_v49 = vadd.f32 %v2494_v60, %v2231_v61 }
 0x73e   : > { %v2147_v1 = vpop.f32.mrf.mxu0 }
 0x73f   : > { %2831 = vtanh.f32 %v2256_v49  ;;  %v2236_v3 = vadd.f32 %v2795_v56, %v2147_v1 }
 0x740   : > { %v2149_v21 = vpop.f32.mrf.mxu0 }
 0x741   : > { %v2257_v22 = vadd.f32 %v2494_v60, %v2236_v3 }
 0x742   : > { %v2152_v7 = vpop.f32.mrf.mxu0 }
 0x743   : > { %2833 = vtanh.f32 %v2257_v22  ;;  %v2241_v17 = vadd.f32 %v2240_v23, %v2152_v7 }
 0x744   : > { %v2154_v35 = vpop.f32.mrf.mxu0 }
 0x745   : > { %v2258_v5 = vadd.f32 %v2494_v60, %v2241_v17 }
 0x746   : > { %v2157_v59 = vpop.f32.mrf.mxu0 }
 0x747   : > { %2835 = vtanh.f32 %v2258_v5  ;;  %v2246_v4 = vadd.f32 %v2798_v63, %v2157_v59 }
 0x748   : > { %v2159_v47 = vpop.f32.mrf.mxu0 }
 0x749   : > { %v2259_v2 = vadd.f32 %v2494_v60, %v2246_v4 }
 0x74b   : > { %2837 = vtanh.f32 %v2259_v2 }
 0x74c   : > { %v2832_v6 = vpop.eup %2831 }
 0x74d   : > { %2292 = vrot.lane.b32.xlu1 %v2832_v6, %s2847_s29 }
 0x750   : > { %v2834_v8 = vpop.eup %2833 }
 0x751   : > { %2294 = vrot.lane.b32.xlu1 %v2834_v8, %s2847_s29 }
 0x754   : > { %v2836_v24 = vpop.eup %2835 }
 0x755   : > { %2296 = vrot.lane.b32.xlu1 %v2836_v24, %s2847_s29 }
 0x758   : > { %v2838_v25 = vpop.eup %2837 }
 0x759   : > { %2298 = vrot.lane.b32.xlu1 %v2838_v25, %s2847_s29 }
 0x7bf   : > { %v2293_v29 = vpop.permute.xlu1 %2292 }
 0x7c0   : > { %v2304_v30 = vmul.f32 %v2293_v29, %v2284_v28 }
 0x7c2   : > { %v2308_v16 = vadd.f32 %v2304_v30, %v2280_v14 }
 0x7c3   : > { %v2295_v37 = vpop.permute.xlu1 %2294 }
 0x7c4   : > { %v2305_v55 = vmul.f32 %v2295_v37, %v2285_v31  ;;  %2316 = vrot.lane.b32.xlu0 %v2308_v16, %s2849_s18 }
 0x7c6   : > { %v2309_v18 = vadd.f32 %v2305_v55, %v2281_v33 }
 0x7c7   : > { %v2297_v19 = vpop.permute.xlu1 %2296 }
 0x7c8   : > { %v2306_v38 = vmul.f32 %v2297_v19, %v2286_v34  ;;  %2318 = vrot.lane.b32.xlu1 %v2309_v18, %s2849_s18 }
 0x7ca   : > { %v2310_v51 = vadd.f32 %v2306_v38, %v2282_v36 }
 0x7cb   : > { %v2299_v52 = vpop.permute.xlu1 %2298 }
 0x7cc   : > { %v2307_v0 = vmul.f32 %v2299_v52, %v2287_v41  ;;  %2320 = vrot.lane.b32.xlu0 %v2310_v51, %s2849_s18 }
 0x7ce   : > { %v2311_v9 = vadd.f32 %v2307_v0, %v2283_v39 }
 0x7d0   : > { %2322 = vrot.lane.b32.xlu1 %v2311_v9, %s2849_s18 }
 0x836   : > { %v2317_v42 = vpop.permute.xlu0 %2316 }
 0x837   : > { %2328 = vst.msk [vmem:[%s356_s20] sm:$0xff] %vm375_vm0, %v2317_v42 }
 0x83a   : > { %v2319_v10 = vpop.permute.xlu1 %2318 }
 0x83b   : > { %2329 = vst.msk [vmem:[%s356_s20 + $0x8] sm:$0xff] %vm375_vm0, %v2319_v10 }
 0x83e   : > { %v2321_v11 = vpop.permute.xlu0 %2320 }
 0x83f   : > { %2330 = vst.msk [vmem:[%s356_s20 + $0x10] sm:$0xff] %vm375_vm0, %v2321_v11 }
 0x842   : > { %v2323_v40 = vpop.permute.xlu1 %2322 }
 0x843   : > { %2331 = vst.msk [vmem:[%s356_s20 + $0x18] sm:$0xff] %vm375_vm0, %v2323_v40 }
 0x844 PF: > { %s19_s30 = sadd.s32 1, %s2845_s30  }
 0x845   : > { %p16_p4 = scmp.ge.s32.totalorder %s19_s30, 4  }
 0x847   :  { %18 = sbr.rel (!%p16_p4) target bundleno = 1 (0x1), region = 90 }

</bundles_post_ra>
